<compile_context>
chip_gen: v7x
topology: tpu7x:2x2x1
jax: 0.10.0
libtpu: 0.0.40
codegen_flags: <defaults>
</compile_context>

<pallas_src>
import functools

import jax
import jax.numpy as jnp
from jax import lax
from jax.experimental import pallas as pl
from jax.experimental.pallas import tpu as pltpu


def _mm(w, x):
    """bf16 MXU matmul with f32 accumulation.

    Shared by the kernel and the pure-JAX reference so the numerics policy
    (where bf16 rounding happens) is identical in both."""
    return jnp.dot(w.astype(jnp.bfloat16), x.astype(jnp.bfloat16),
                   preferred_element_type=jnp.float32)


# ---------------------------------------------------------------------------
# Fused SRA kernel.  grid=(b,): one grid step per batch element.
# Per step (batch dim squeezed away by the BlockSpecs):
#   x_ref    (C,   t*hwp) bf16  re_featmap, frames evens-then-odds on lanes
#   emb_ref  (128, t*hwp) bf16  Embeding_feature
#   fm_ref   (C,   t*hwp) f32   feat_map
#   agg_ref  (C,  tp*hwp) f32   aggregative_feature (aliased with the output)
#   vexp_ref (C,   t*hwp) f32   feat_vect replicated across each frame's lanes
#   out_ref  (C,  tp*hwp) f32
#   gsj_scr  (2*hwp, t*hwp) f32 stacked Gs^T / Gs scratch (fully re-written
#                               every grid step before it is read)
# ---------------------------------------------------------------------------
def _sra_kernel(x_ref, emb_ref, fm_ref, agg_ref, vexp_ref,
                wa_ref, ba_ref, wd_ref, bd_ref,
                wg_ref, bg_ref,
                ws1e_ref, ws1g_ref, bs1_ref,
                ws2_ref, bs2_ref,
                w1_ref, b1_ref, w2_ref, b2_ref,
                out_ref, gsj_scr, *, t, hwp):
    f32 = jnp.float32

    # ---- alphi / delta 1x1 conv (+folded BN) + ReLU, all frames lane-batched.
    x = x_ref[...]                                               # (C, t*hwp)
    alphi = jnp.maximum(_mm(wa_ref[...], x) + ba_ref[...], 0.0)  # (C/8, t*hwp)
    delta = jnp.maximum(_mm(wd_ref[...], x) + bd_ref[...], 0.0)  # (C/8, t*hwp)
    alphi_b = alphi.astype(jnp.bfloat16)
    delta_b = delta.astype(jnp.bfloat16)

    # ---- per-frame spatial relation Gs into one stacked scratch:
    #        rows [0, hwp)      = Gs^T  (the Gs_in channels of Gs_joint)
    #        rows [hwp, 2*hwp)  = Gs    (the Gs_out channels)
    # Gs^T is produced by a second tiny K=C/8 dot_general rather than a
    # materialized 64x64 transpose (negligible MXU work in the batched design,
    # and a proven lowering).  Only the tiny (C/8, hwp) slices remain per-frame.
    # TODO(synk): switch to lax.fori_loop if t ever becomes large.
    for f in range(t):
        a_f = alphi_b[:, f * hwp:(f + 1) * hwp]                  # (C/8, hwp)
        d_f = delta_b[:, f * hwp:(f + 1) * hwp]                  # (C/8, hwp)
        gs = lax.dot_general(a_f, d_f, (((0,), (0,)), ((), ())),
                             preferred_element_type=f32)         # Gs[s, u]
        gs_t = lax.dot_general(d_f, a_f, (((0,), (0,)), ((), ())),
                               preferred_element_type=f32)       # Gs^T
        gsj_scr[0:hwp, f * hwp:(f + 1) * hwp] = gs_t
        gsj_scr[hwp:2 * hwp, f * hwp:(f + 1) * hwp] = gs

    # ---- gg_spatial: ONE K=2*hwp matmul over all frames' lanes.
    g = jnp.maximum(_mm(wg_ref[...], gsj_scr[...]) + bg_ref[...], 0.0)

    # ---- spa_para head, fully lane-batched (embedding branch hoisted; gate
    #      never leaves registers).
    s1 = jnp.maximum(_mm(ws1e_ref[...], emb_ref[...])
                     + _mm(ws1g_ref[...], g) + bs1_ref[...], 0.0)
    spa = jax.nn.sigmoid(_mm(ws2_ref[...], s1) + bs2_ref[...])   # (1, t*hwp)

    # ---- app_channel MLP (f32) on the lane-replicated feature vector, so the
    #      channel gate comes out already broadcast over each frame's lanes.
    hmid = jnp.maximum(jnp.dot(w1_ref[...], vexp_ref[...],
                               preferred_element_type=f32) + b1_ref[...], 0.0)
    chan = jax.nn.sigmoid(jnp.dot(w2_ref[...], hmid,
                                  preferred_element_type=f32) + b2_ref[...])

    # ---- pairwise aggregation: frames are evens-then-odds, so the two halves
    #      line up pair-wise -> one lane-dense, 128-aligned slab store.
    prod = chan * (spa * fm_ref[...])                            # (C, t*hwp)
    half = (t // 2) * hwp
    out_ref[...] = agg_ref[...] + jnp.maximum(
        prod[:, :half] + prod[:, half:], 0.0)


def _sra_pallas_call(x3, emb3, fm3, agg3, vexp3, wts, *, t, hwp):
    b, c, _ = x3.shape
    tp = t // 2
    kernel = functools.partial(_sra_kernel, t=t, hwp=hwp)

    def batched(arr):  # per-batch-element block, batch dim squeezed
        return pl.BlockSpec((None,) + tuple(arr.shape[1:]),
                            lambda i: (i, 0, 0))

    def whole(arr):    # loop-invariant weight, DMA'd once
        nd = arr.ndim
        return pl.BlockSpec(arr.shape, lambda i: (0,) * nd)

    return pl.pallas_call(
        kernel,
        grid=(b,),
        in_specs=[batched(x3), batched(emb3), batched(fm3), batched(agg3),
                  batched(vexp3)] + [whole(w) for w in wts],
        out_specs=pl.BlockSpec((None, c, tp * hwp), lambda i: (i, 0, 0)),
        out_shape=jax.ShapeDtypeStruct((b, c, tp * hwp), jnp.float32),
        scratch_shapes=[pltpu.VMEM((2 * hwp, t * hwp), jnp.float32)],
        input_output_aliases={3: 0},     # accumulate in place into agg's buffer
        compiler_params=pltpu.CompilerParams(
            dimension_semantics=("parallel",)),
    )(x3, emb3, fm3, agg3, vexp3, *wts)


# ---------------------------------------------------------------------------
# Parameter init (deterministic, mimics weights_init_kaiming) + BN folding.
# ---------------------------------------------------------------------------
def _kaiming(key, shape, fan):
    return (jax.random.normal(key, shape, jnp.float32)
            * jnp.sqrt(2.0 / fan).astype(jnp.float32))


def _fold_bn(w, n_out, eps=1e-5):
    # eval-mode BN with gamma=1, beta=0, running_mean=0, running_var=1
    gamma = jnp.ones((n_out,), jnp.float32)
    beta = jnp.zeros((n_out,), jnp.float32)
    mean = jnp.zeros((n_out,), jnp.float32)
    var = jnp.ones((n_out,), jnp.float32)
    scale = gamma / jnp.sqrt(var + eps)
    return w * scale[:, None], (beta - mean * scale)[:, None]


def init_sra_params(key, inplanes, hw):
    c8 = inplanes // 8
    ks = jax.random.split(key, 7)
    wa, ba = _fold_bn(_kaiming(ks[0], (c8, inplanes), inplanes), c8)
    wd, bd = _fold_bn(_kaiming(ks[1], (c8, inplanes), inplanes), c8)
    wg, bg = _fold_bn(_kaiming(ks[2], (128, 2 * hw), 2 * hw), 128)
    ws1, bs1 = _fold_bn(_kaiming(ks[3], (128, 256), 256), 128)
    ws2, bs2 = _fold_bn(_kaiming(ks[4], (1, 128), 128), 1)
    w1 = _kaiming(ks[5], (c8, inplanes), c8)          # Linear: kaiming fan_out
    w2 = _kaiming(ks[6], (inplanes, c8), inplanes)
    return dict(
        wa=wa, ba=ba, wd=wd, bd=bd, wg=wg, bg=bg,
        ws1_e=ws1[:, :128], ws1_g=ws1[:, 128:], bs1=bs1,
        ws2=ws2, bs2=bs2,
        w1=w1, b1=jnp.zeros((c8, 1), jnp.float32),
        w2=w2, b2=jnp.zeros((inplanes, 1), jnp.float32),
    )


# ---------------------------------------------------------------------------
# SRA forward: layout glue + the single fused pallas_call.
# ---------------------------------------------------------------------------
def sra_forward(p, feat_map, re_featmap, embeding_feature, feat_vect,
                aggregative_feature):
    b, t, c, h, w = feat_map.shape
    hw = h * w
    assert t % 2 == 0, "SRA aggregates frames pairwise; t must be even"
    assert 2 * hw == p["wg"].shape[1], "gg_spatial expects in_channels == 2*h*w"
    hwp = -(-hw // 64) * 64            # pad H*W=49 -> 64 lanes per frame
    tp = t // 2
    bf16 = jnp.bfloat16

    def evens_first(a):  # (b, t, ...) -> frames reordered [0, 2, ..., 1, 3, ...]
        return (a.reshape((b, tp, 2) + a.shape[2:])
                 .swapaxes(1, 2)
                 .reshape((b, t) + a.shape[2:]))

    def lane_slab(a4, dtype):  # (b, t, ch, hw) -> (b, ch, t*hwp), evens-first
        ch = a4.shape[2]
        a4 = evens_first(a4)
        a4 = jnp.pad(a4, ((0, 0), (0, 0), (0, 0), (0, hwp - hw)))
        return a4.transpose(0, 2, 1, 3).reshape(b, ch, t * hwp).astype(dtype)

    x3 = lane_slab(re_featmap.reshape(b, t, c, hw), bf16)
    emb3 = lane_slab(embeding_feature.reshape(b, t, -1, hw), bf16)
    fm3 = lane_slab(feat_map.reshape(b, t, c, hw), jnp.float32)

    agg4 = jnp.pad(aggregative_feature.reshape(b, tp, c, hw),
                   ((0, 0), (0, 0), (0, 0), (0, hwp - hw)))
    agg3 = agg4.transpose(0, 2, 1, 3).reshape(b, c, tp * hwp).astype(jnp.float32)

    v3 = evens_first(feat_vect).transpose(0, 2, 1)                 # (b, c, t)
    vexp3 = jnp.repeat(v3, hwp, axis=2).astype(jnp.float32)        # (b, c, t*hwp)

    # gg_spatial weight: split the cat(Gs_in, Gs_out) halves and zero-pad the
    # spatial columns 49..63 so padded lanes of Gs never reach valid outputs.
    wg = p["wg"]
    wg_pad = jnp.concatenate(
        [jnp.pad(wg[:, :hw], ((0, 0), (0, hwp - hw))),
         jnp.pad(wg[:, hw:], ((0, 0), (0, hwp - hw)))], axis=1)    # (128, 2*hwp)

    wts = (p["wa"].astype(bf16), p["ba"],
           p["wd"].astype(bf16), p["bd"],
           wg_pad.astype(bf16), p["bg"],
           p["ws1_e"].astype(bf16), p["ws1_g"].astype(bf16), p["bs1"],
           p["ws2"].astype(bf16), p["bs2"],
           p["w1"], p["b1"], p["w2"], p["b2"])

    out3 = _sra_pallas_call(x3, emb3, fm3, agg3, vexp3, wts,
                            t=t, hwp=hwp)                          # (b, c, tp*hwp)

    out = out3.reshape(b, c, tp, hwp)[:, :, :, :hw]
    return out.transpose(0, 2, 1, 3).reshape(b * tp, c, h, w)


# ---------------------------------------------------------------------------
# Pure-JAX reference (mirrors the PyTorch forward, same bf16 matmul policy).
# ---------------------------------------------------------------------------
def sra_reference(p, feat_map, re_featmap, emb, feat_vect, agg):
    bf16, f32 = jnp.bfloat16, jnp.float32

    def conv1x1(wt, xx):  # wt (O,K), xx (N,K,S)
        return jnp.einsum("ok,nks->nos", wt.astype(bf16), xx.astype(bf16),
                          preferred_element_type=f32)

    b, t, c, h, w_ = feat_map.shape
    hw = h * w_
    n = b * t
    x = re_featmap.reshape(n, c, hw)
    alphi = jnp.maximum(conv1x1(p["wa"], x) + p["ba"][None], 0.0)
    delta = jnp.maximum(conv1x1(p["wd"], x) + p["bd"][None], 0.0)
    gs = jnp.einsum("nks,nkt->nst", alphi.astype(bf16), delta.astype(bf16),
                    preferred_element_type=f32)
    joint = jnp.concatenate([jnp.swapaxes(gs, 1, 2), gs], axis=1)
    g = jnp.maximum(conv1x1(p["wg"], joint) + p["bg"][None], 0.0)
    cat = jnp.concatenate([emb.reshape(n, -1, hw), g], axis=1)
    ws1 = jnp.concatenate([p["ws1_e"], p["ws1_g"]], axis=1)
    s1 = jnp.maximum(conv1x1(ws1, cat) + p["bs1"][None], 0.0)
    spa = jax.nn.sigmoid(conv1x1(p["ws2"], s1) + p["bs2"][None])
    v = feat_vect.reshape(n, c)
    hmid = jnp.maximum(v @ p["w1"].T + p["b1"][:, 0][None], 0.0)
    ch = jax.nn.sigmoid(hmid @ p["w2"].T + p["b2"][:, 0][None])
    spa = spa.reshape(b, t, 1, hw)
    ch = ch.reshape(b, t, c, 1)
    fm = feat_map.reshape(b, t, c, hw)
    aggm = agg.reshape(b, t // 2, c, hw)
    outs = []
    for i in range(0, t, 2):
        p0 = ch[:, i] * spa[:, i] * fm[:, i]
        p1 = ch[:, i + 1] * spa[:, i + 1] * fm[:, i + 1]
        outs.append(aggm[:, i // 2] + jnp.maximum(p0 + p1, 0.0))
    return jnp.stack(outs, axis=1).reshape(b * (t // 2), c, h, w_)


if __name__ == "__main__":
    b, t = 2, 4
    inplanes = 32
    h = w = 7              # forced by gg_spatial in_channels=98 == 2*h*w
    hw = h * w

    key = jax.random.PRNGKey(0)
    kp, k1, k2, k3, k4, k5 = jax.random.split(key, 6)

    params = init_sra_params(kp, inplanes, hw)

    feat_map = jax.random.normal(k1, (b, t, inplanes, h, w), jnp.float32)
    re_featmap = jax.random.normal(k2, (b * t, inplanes, h, w), jnp.float32)
    embeding_feature = jax.random.normal(k3, (b, t, 128, h, w), jnp.float32)
    feat_vect = jax.random.normal(k4, (b, t, inplanes), jnp.float32)
    aggregative_feature = jax.random.normal(
        k5, (b, t // 2, inplanes, h, w), jnp.float32)

    fwd = jax.jit(sra_forward)
    out = jax.block_until_ready(fwd(params, feat_map, re_featmap,
                                    embeding_feature, feat_vect,
                                    aggregative_feature))

    ref = sra_reference(params, feat_map, re_featmap, embeding_feature,
                        feat_vect, aggregative_feature)
    assert out.shape == (b * (t // 2), inplanes, h, w)
    # Kernel and reference share the same bf16-matmul / f32-accumulate policy;
    # residual differences are accumulation-order only (plus rare bf16
    # rounding-boundary flips), hence the small tolerance.
    assert jnp.allclose(out, ref, atol=5e-3, rtol=5e-3), (
        float(jnp.max(jnp.abs(out - ref))))

    print("KERNEL_OK")
</pallas_src>

<mosaic_0001>
module attributes {stable_mosaic.version = 11 : i64} {
  func.func @_sra_kernel(%arg0: i32, %arg1: memref<1x32x256xbf16, #tpu.memory_space<vmem>>, %arg2: memref<1x128x256xbf16, #tpu.memory_space<vmem>>, %arg3: memref<1x32x256xf32, #tpu.memory_space<vmem>>, %arg4: memref<1x32x128xf32, #tpu.memory_space<vmem>>, %arg5: memref<1x32x256xf32, #tpu.memory_space<vmem>>, %arg6: memref<4x32xbf16, #tpu.memory_space<vmem>>, %arg7: memref<4x1xf32, #tpu.memory_space<vmem>>, %arg8: memref<4x32xbf16, #tpu.memory_space<vmem>>, %arg9: memref<4x1xf32, #tpu.memory_space<vmem>>, %arg10: memref<128x128xbf16, #tpu.memory_space<vmem>>, %arg11: memref<128x1xf32, #tpu.memory_space<vmem>>, %arg12: memref<128x128xbf16, #tpu.memory_space<vmem>>, %arg13: memref<128x128xbf16, #tpu.memory_space<vmem>>, %arg14: memref<128x1xf32, #tpu.memory_space<vmem>>, %arg15: memref<1x128xbf16, #tpu.memory_space<vmem>>, %arg16: memref<1x1xf32, #tpu.memory_space<vmem>>, %arg17: memref<4x32xf32, #tpu.memory_space<vmem>>, %arg18: memref<4x1xf32, #tpu.memory_space<vmem>>, %arg19: memref<32x4xf32, #tpu.memory_space<vmem>>, %arg20: memref<32x1xf32, #tpu.memory_space<vmem>>, %arg21: memref<1x32x128xf32, #tpu.memory_space<vmem>>, %arg22: memref<128x256xf32, #tpu.memory_space<vmem>>) attributes {dimension_semantics = [#tpu.dimension_semantics<parallel>], iteration_bounds = array<i64: 2>, scalar_prefetch = 0 : i64, scratch_operands = 1 : i64, tpu.core_type = #tpu.core_type<tc>, window_params = [{transform_indices = @transform_0, window_bounds = array<i64: 1, 32, 256>}, {transform_indices = @transform_1, window_bounds = array<i64: 1, 128, 256>}, {transform_indices = @transform_2, window_bounds = array<i64: 1, 32, 256>}, {transform_indices = @transform_3, window_bounds = array<i64: 1, 32, 128>}, {transform_indices = @transform_4, window_bounds = array<i64: 1, 32, 256>}, {pipeline_mode = #tpu.pipeline_mode<synchronous>, transform_indices = @transform_5, window_bounds = array<i64: 4, 32>}, {pipeline_mode = #tpu.pipeline_mode<synchronous>, transform_indices = @transform_6, window_bounds = array<i64: 4, 1>}, {pipeline_mode = #tpu.pipeline_mode<synchronous>, transform_indices = @transform_7, window_bounds = array<i64: 4, 32>}, {pipeline_mode = #tpu.pipeline_mode<synchronous>, transform_indices = @transform_8, window_bounds = array<i64: 4, 1>}, {pipeline_mode = #tpu.pipeline_mode<synchronous>, transform_indices = @transform_9, window_bounds = array<i64: 128, 128>}, {pipeline_mode = #tpu.pipeline_mode<synchronous>, transform_indices = @transform_10, window_bounds = array<i64: 128, 1>}, {pipeline_mode = #tpu.pipeline_mode<synchronous>, transform_indices = @transform_11, window_bounds = array<i64: 128, 128>}, {pipeline_mode = #tpu.pipeline_mode<synchronous>, transform_indices = @transform_12, window_bounds = array<i64: 128, 128>}, {pipeline_mode = #tpu.pipeline_mode<synchronous>, transform_indices = @transform_13, window_bounds = array<i64: 128, 1>}, {pipeline_mode = #tpu.pipeline_mode<synchronous>, transform_indices = @transform_14, window_bounds = array<i64: 1, 128>}, {pipeline_mode = #tpu.pipeline_mode<synchronous>, transform_indices = @transform_15, window_bounds = array<i64: 1, 1>}, {pipeline_mode = #tpu.pipeline_mode<synchronous>, transform_indices = @transform_16, window_bounds = array<i64: 4, 32>}, {pipeline_mode = #tpu.pipeline_mode<synchronous>, transform_indices = @transform_17, window_bounds = array<i64: 4, 1>}, {pipeline_mode = #tpu.pipeline_mode<synchronous>, transform_indices = @transform_18, window_bounds = array<i64: 32, 4>}, {pipeline_mode = #tpu.pipeline_mode<synchronous>, transform_indices = @transform_19, window_bounds = array<i64: 32, 1>}, {transform_indices = @transform_20, window_bounds = array<i64: 1, 32, 128>}]} {
    %c0 = arith.constant 0 : index
    %c0_0 = arith.constant 0 : index
    %c0_1 = arith.constant 0 : index
    %0 = vector.load %arg1[%c0, %c0_0, %c0_1] : memref<1x32x256xbf16, #tpu.memory_space<vmem>>, vector<1x32x256xbf16>
    %1 = vector.shape_cast %0 : vector<1x32x256xbf16> to vector<32x256xbf16>
    %c0_2 = arith.constant 0 : index
    %c0_3 = arith.constant 0 : index
    %2 = vector.load %arg6[%c0_2, %c0_3] : memref<4x32xbf16, #tpu.memory_space<vmem>>, vector<4x32xbf16>
    %cst = arith.constant dense<0.000000e+00> : vector<4x256xf32>
    %3 = tpu.matmul %2, %1, %cst {dimension_numbers = #tpu.dot_dimension_numbers<[1], [0], [0], [1], [0, 0, 1, 1], [], []>} : vector<4x32xbf16>, vector<32x256xbf16>, vector<4x256xf32> -> vector<4x256xf32>
    %c0_4 = arith.constant 0 : index
    %c0_5 = arith.constant 0 : index
    %4 = vector.load %arg7[%c0_4, %c0_5] : memref<4x1xf32, #tpu.memory_space<vmem>>, vector<4x1xf32>
    %5 = vector.broadcast %4 : vector<4x1xf32> to vector<4x256xf32>
    %6 = arith.addf %3, %5 : vector<4x256xf32>
    %cst_6 = arith.constant 0.000000e+00 : f32
    %7 = vector.broadcast %cst_6 : f32 to vector<4x256xf32>
    %8 = arith.maximumf %6, %7 : vector<4x256xf32>
    %c0_7 = arith.constant 0 : index
    %c0_8 = arith.constant 0 : index
    %9 = vector.load %arg8[%c0_7, %c0_8] : memref<4x32xbf16, #tpu.memory_space<vmem>>, vector<4x32xbf16>
    %cst_9 = arith.constant dense<0.000000e+00> : vector<4x256xf32>
    %10 = tpu.matmul %9, %1, %cst_9 {dimension_numbers = #tpu.dot_dimension_numbers<[1], [0], [0], [1], [0, 0, 1, 1], [], []>} : vector<4x32xbf16>, vector<32x256xbf16>, vector<4x256xf32> -> vector<4x256xf32>
    %c0_10 = arith.constant 0 : index
    %c0_11 = arith.constant 0 : index
    %11 = vector.load %arg9[%c0_10, %c0_11] : memref<4x1xf32, #tpu.memory_space<vmem>>, vector<4x1xf32>
    %12 = vector.broadcast %11 : vector<4x1xf32> to vector<4x256xf32>
    %13 = arith.addf %10, %12 : vector<4x256xf32>
    %cst_12 = arith.constant 0.000000e+00 : f32
    %14 = vector.broadcast %cst_12 : f32 to vector<4x256xf32>
    %15 = arith.maximumf %13, %14 : vector<4x256xf32>
    %16 = arith.truncf %8 : vector<4x256xf32> to vector<4x256xbf16>
    %17 = arith.truncf %15 : vector<4x256xf32> to vector<4x256xbf16>
    %18 = vector.extract_strided_slice %16 {offsets = [0, 0], sizes = [4, 64], strides = [1, 1]} : vector<4x256xbf16> to vector<4x64xbf16>
    %19 = vector.extract_strided_slice %17 {offsets = [0, 0], sizes = [4, 64], strides = [1, 1]} : vector<4x256xbf16> to vector<4x64xbf16>
    %cst_13 = arith.constant dense<0.000000e+00> : vector<64x64xf32>
    %20 = tpu.matmul %18, %19, %cst_13 {dimension_numbers = #tpu.dot_dimension_numbers<[0], [0], [1], [1], [0, 1, 1, 1], [], []>} : vector<4x64xbf16>, vector<4x64xbf16>, vector<64x64xf32> -> vector<64x64xf32>
    %cst_14 = arith.constant dense<0.000000e+00> : vector<64x64xf32>
    %21 = tpu.matmul %19, %18, %cst_14 {dimension_numbers = #tpu.dot_dimension_numbers<[0], [0], [1], [1], [0, 1, 1, 1], [], []>} : vector<4x64xbf16>, vector<4x64xbf16>, vector<64x64xf32> -> vector<64x64xf32>
    %c0_15 = arith.constant 0 : index
    %c0_16 = arith.constant 0 : index
    %22 = vector.load %arg22[%c0_15, %c0_16] : memref<128x256xf32, #tpu.memory_space<vmem>>, vector<64x64xf32>
    tpu.vector_store %arg22[%c0_15, %c0_16], %21 {strides = array<i32>} : memref<128x256xf32, #tpu.memory_space<vmem>>, vector<64x64xf32>,
    %c64 = arith.constant 64 : index
    %c0_17 = arith.constant 0 : index
    %23 = vector.load %arg22[%c64, %c0_17] : memref<128x256xf32, #tpu.memory_space<vmem>>, vector<64x64xf32>
    tpu.vector_store %arg22[%c64, %c0_17], %20 {strides = array<i32>} : memref<128x256xf32, #tpu.memory_space<vmem>>, vector<64x64xf32>,
    %24 = vector.extract_strided_slice %16 {offsets = [0, 64], sizes = [4, 64], strides = [1, 1]} : vector<4x256xbf16> to vector<4x64xbf16>
    %25 = vector.extract_strided_slice %17 {offsets = [0, 64], sizes = [4, 64], strides = [1, 1]} : vector<4x256xbf16> to vector<4x64xbf16>
    %cst_18 = arith.constant dense<0.000000e+00> : vector<64x64xf32>
    %26 = tpu.matmul %24, %25, %cst_18 {dimension_numbers = #tpu.dot_dimension_numbers<[0], [0], [1], [1], [0, 1, 1, 1], [], []>} : vector<4x64xbf16>, vector<4x64xbf16>, vector<64x64xf32> -> vector<64x64xf32>
    %cst_19 = arith.constant dense<0.000000e+00> : vector<64x64xf32>
    %27 = tpu.matmul %25, %24, %cst_19 {dimension_numbers = #tpu.dot_dimension_numbers<[0], [0], [1], [1], [0, 1, 1, 1], [], []>} : vector<4x64xbf16>, vector<4x64xbf16>, vector<64x64xf32> -> vector<64x64xf32>
    %c0_20 = arith.constant 0 : index
    %c64_21 = arith.constant 64 : index
    %28 = vector.load %arg22[%c0_20, %c64_21] : memref<128x256xf32, #tpu.memory_space<vmem>>, vector<64x64xf32>
    tpu.vector_store %arg22[%c0_20, %c64_21], %27 {strides = array<i32>} : memref<128x256xf32, #tpu.memory_space<vmem>>, vector<64x64xf32>,
    %c64_22 = arith.constant 64 : index
    %c64_23 = arith.constant 64 : index
    %29 = vector.load %arg22[%c64_22, %c64_23] : memref<128x256xf32, #tpu.memory_space<vmem>>, vector<64x64xf32>
    tpu.vector_store %arg22[%c64_22, %c64_23], %26 {strides = array<i32>} : memref<128x256xf32, #tpu.memory_space<vmem>>, vector<64x64xf32>,
    %30 = vector.extract_strided_slice %16 {offsets = [0, 128], sizes = [4, 64], strides = [1, 1]} : vector<4x256xbf16> to vector<4x64xbf16>
    %31 = vector.extract_strided_slice %17 {offsets = [0, 128], sizes = [4, 64], strides = [1, 1]} : vector<4x256xbf16> to vector<4x64xbf16>
    %cst_24 = arith.constant dense<0.000000e+00> : vector<64x64xf32>
    %32 = tpu.matmul %30, %31, %cst_24 {dimension_numbers = #tpu.dot_dimension_numbers<[0], [0], [1], [1], [0, 1, 1, 1], [], []>} : vector<4x64xbf16>, vector<4x64xbf16>, vector<64x64xf32> -> vector<64x64xf32>
    %cst_25 = arith.constant dense<0.000000e+00> : vector<64x64xf32>
    %33 = tpu.matmul %31, %30, %cst_25 {dimension_numbers = #tpu.dot_dimension_numbers<[0], [0], [1], [1], [0, 1, 1, 1], [], []>} : vector<4x64xbf16>, vector<4x64xbf16>, vector<64x64xf32> -> vector<64x64xf32>
    %c0_26 = arith.constant 0 : index
    %c128 = arith.constant 128 : index
    %34 = vector.load %arg22[%c0_26, %c128] : memref<128x256xf32, #tpu.memory_space<vmem>>, vector<64x64xf32>
    tpu.vector_store %arg22[%c0_26, %c128], %33 {strides = array<i32>} : memref<128x256xf32, #tpu.memory_space<vmem>>, vector<64x64xf32>,
    %c64_27 = arith.constant 64 : index
    %c128_28 = arith.constant 128 : index
    %35 = vector.load %arg22[%c64_27, %c128_28] : memref<128x256xf32, #tpu.memory_space<vmem>>, vector<64x64xf32>
    tpu.vector_store %arg22[%c64_27, %c128_28], %32 {strides = array<i32>} : memref<128x256xf32, #tpu.memory_space<vmem>>, vector<64x64xf32>,
    %36 = vector.extract_strided_slice %16 {offsets = [0, 192], sizes = [4, 64], strides = [1, 1]} : vector<4x256xbf16> to vector<4x64xbf16>
    %37 = vector.extract_strided_slice %17 {offsets = [0, 192], sizes = [4, 64], strides = [1, 1]} : vector<4x256xbf16> to vector<4x64xbf16>
    %cst_29 = arith.constant dense<0.000000e+00> : vector<64x64xf32>
    %38 = tpu.matmul %36, %37, %cst_29 {dimension_numbers = #tpu.dot_dimension_numbers<[0], [0], [1], [1], [0, 1, 1, 1], [], []>} : vector<4x64xbf16>, vector<4x64xbf16>, vector<64x64xf32> -> vector<64x64xf32>
    %cst_30 = arith.constant dense<0.000000e+00> : vector<64x64xf32>
    %39 = tpu.matmul %37, %36, %cst_30 {dimension_numbers = #tpu.dot_dimension_numbers<[0], [0], [1], [1], [0, 1, 1, 1], [], []>} : vector<4x64xbf16>, vector<4x64xbf16>, vector<64x64xf32> -> vector<64x64xf32>
    %c0_31 = arith.constant 0 : index
    %c192 = arith.constant 192 : index
    %40 = vector.load %arg22[%c0_31, %c192] : memref<128x256xf32, #tpu.memory_space<vmem>>, vector<64x64xf32>
    tpu.vector_store %arg22[%c0_31, %c192], %39 {strides = array<i32>} : memref<128x256xf32, #tpu.memory_space<vmem>>, vector<64x64xf32>,
    %c64_32 = arith.constant 64 : index
    %c192_33 = arith.constant 192 : index
    %41 = vector.load %arg22[%c64_32, %c192_33] : memref<128x256xf32, #tpu.memory_space<vmem>>, vector<64x64xf32>
    tpu.vector_store %arg22[%c64_32, %c192_33], %38 {strides = array<i32>} : memref<128x256xf32, #tpu.memory_space<vmem>>, vector<64x64xf32>,
    %c0_34 = arith.constant 0 : index
    %c0_35 = arith.constant 0 : index
    %42 = vector.load %arg10[%c0_34, %c0_35] : memref<128x128xbf16, #tpu.memory_space<vmem>>, vector<128x128xbf16>
    %c0_36 = arith.constant 0 : index
    %c0_37 = arith.constant 0 : index
    %43 = vector.load %arg22[%c0_36, %c0_37] : memref<128x256xf32, #tpu.memory_space<vmem>>, vector<128x256xf32>
    %44 = arith.truncf %43 : vector<128x256xf32> to vector<128x256xbf16>
    %cst_38 = arith.constant dense<0.000000e+00> : vector<128x256xf32>
    %45 = tpu.matmul %42, %44, %cst_38 {dimension_numbers = #tpu.dot_dimension_numbers<[1], [0], [0], [1], [0, 0, 1, 1], [], []>} : vector<128x128xbf16>, vector<128x256xbf16>, vector<128x256xf32> -> vector<128x256xf32>
    %c0_39 = arith.constant 0 : index
    %c0_40 = arith.constant 0 : index
    %46 = vector.load %arg11[%c0_39, %c0_40] : memref<128x1xf32, #tpu.memory_space<vmem>>, vector<128x1xf32>
    %47 = vector.broadcast %46 : vector<128x1xf32> to vector<128x256xf32>
    %48 = arith.addf %45, %47 : vector<128x256xf32>
    %cst_41 = arith.constant 0.000000e+00 : f32
    %49 = vector.broadcast %cst_41 : f32 to vector<128x256xf32>
    %50 = arith.maximumf %48, %49 : vector<128x256xf32>
    %c0_42 = arith.constant 0 : index
    %c0_43 = arith.constant 0 : index
    %51 = vector.load %arg12[%c0_42, %c0_43] : memref<128x128xbf16, #tpu.memory_space<vmem>>, vector<128x128xbf16>
    %c0_44 = arith.constant 0 : index
    %c0_45 = arith.constant 0 : index
    %c0_46 = arith.constant 0 : index
    %52 = vector.load %arg2[%c0_44, %c0_45, %c0_46] : memref<1x128x256xbf16, #tpu.memory_space<vmem>>, vector<1x128x256xbf16>
    %53 = vector.shape_cast %52 : vector<1x128x256xbf16> to vector<128x256xbf16>
    %cst_47 = arith.constant dense<0.000000e+00> : vector<128x256xf32>
    %54 = tpu.matmul %51, %53, %cst_47 {dimension_numbers = #tpu.dot_dimension_numbers<[1], [0], [0], [1], [0, 0, 1, 1], [], []>} : vector<128x128xbf16>, vector<128x256xbf16>, vector<128x256xf32> -> vector<128x256xf32>
    %c0_48 = arith.constant 0 : index
    %c0_49 = arith.constant 0 : index
    %55 = vector.load %arg13[%c0_48, %c0_49] : memref<128x128xbf16, #tpu.memory_space<vmem>>, vector<128x128xbf16>
    %56 = arith.truncf %50 : vector<128x256xf32> to vector<128x256xbf16>
    %cst_50 = arith.constant dense<0.000000e+00> : vector<128x256xf32>
    %57 = tpu.matmul %55, %56, %cst_50 {dimension_numbers = #tpu.dot_dimension_numbers<[1], [0], [0], [1], [0, 0, 1, 1], [], []>} : vector<128x128xbf16>, vector<128x256xbf16>, vector<128x256xf32> -> vector<128x256xf32>
    %58 = arith.addf %54, %57 : vector<128x256xf32>
    %c0_51 = arith.constant 0 : index
    %c0_52 = arith.constant 0 : index
    %59 = vector.load %arg14[%c0_51, %c0_52] : memref<128x1xf32, #tpu.memory_space<vmem>>, vector<128x1xf32>
    %60 = vector.broadcast %59 : vector<128x1xf32> to vector<128x256xf32>
    %61 = arith.addf %58, %60 : vector<128x256xf32>
    %cst_53 = arith.constant 0.000000e+00 : f32
    %62 = vector.broadcast %cst_53 : f32 to vector<128x256xf32>
    %63 = arith.maximumf %61, %62 : vector<128x256xf32>
    %c0_54 = arith.constant 0 : index
    %c0_55 = arith.constant 0 : index
    %64 = vector.load %arg15[%c0_54, %c0_55] : memref<1x128xbf16, #tpu.memory_space<vmem>>, vector<1x128xbf16>
    %65 = arith.truncf %63 : vector<128x256xf32> to vector<128x256xbf16>
    %cst_56 = arith.constant dense<0.000000e+00> : vector<1x256xf32>
    %66 = tpu.matmul %64, %65, %cst_56 {dimension_numbers = #tpu.dot_dimension_numbers<[1], [0], [0], [1], [0, 0, 1, 1], [], []>} : vector<1x128xbf16>, vector<128x256xbf16>, vector<1x256xf32> -> vector<1x256xf32>
    %c0_57 = arith.constant 0 : index
    %c0_58 = arith.constant 0 : index
    %67 = vector.load %arg16[%c0_57, %c0_58] : memref<1x1xf32, #tpu.memory_space<vmem>>, vector<1x1xf32>
    %68 = vector.broadcast %67 : vector<1x1xf32> to vector<1x256xf32>
    %69 = arith.addf %66, %68 : vector<1x256xf32>
    %70 = arith.negf %69 : vector<1x256xf32>
    %71 = math.exp %70 : vector<1x256xf32>
    %cst_59 = arith.constant 1.000000e+00 : f32
    %72 = vector.broadcast %cst_59 : f32 to vector<1x256xf32>
    %73 = arith.addf %72, %71 : vector<1x256xf32>
    %74 = arith.divf %72, %73 : vector<1x256xf32>
    %c0_60 = arith.constant 0 : index
    %c0_61 = arith.constant 0 : index
    %75 = vector.load %arg17[%c0_60, %c0_61] : memref<4x32xf32, #tpu.memory_space<vmem>>, vector<4x32xf32>
    %c0_62 = arith.constant 0 : index
    %c0_63 = arith.constant 0 : index
    %c0_64 = arith.constant 0 : index
    %76 = vector.load %arg5[%c0_62, %c0_63, %c0_64] : memref<1x32x256xf32, #tpu.memory_space<vmem>>, vector<1x32x256xf32>
    %77 = vector.shape_cast %76 : vector<1x32x256xf32> to vector<32x256xf32>
    %cst_65 = arith.constant dense<0.000000e+00> : vector<4x256xf32>
    %78 = tpu.matmul %75, %77, %cst_65 {dimension_numbers = #tpu.dot_dimension_numbers<[1], [0], [0], [1], [0, 0, 1, 1], [], []>} : vector<4x32xf32>, vector<32x256xf32>, vector<4x256xf32> -> vector<4x256xf32>
    %c0_66 = arith.constant 0 : index
    %c0_67 = arith.constant 0 : index
    %79 = vector.load %arg18[%c0_66, %c0_67] : memref<4x1xf32, #tpu.memory_space<vmem>>, vector<4x1xf32>
    %80 = vector.broadcast %79 : vector<4x1xf32> to vector<4x256xf32>
    %81 = arith.addf %78, %80 : vector<4x256xf32>
    %cst_68 = arith.constant 0.000000e+00 : f32
    %82 = vector.broadcast %cst_68 : f32 to vector<4x256xf32>
    %83 = arith.maximumf %81, %82 : vector<4x256xf32>
    %c0_69 = arith.constant 0 : index
    %c0_70 = arith.constant 0 : index
    %84 = vector.load %arg19[%c0_69, %c0_70] : memref<32x4xf32, #tpu.memory_space<vmem>>, vector<32x4xf32>
    %cst_71 = arith.constant dense<0.000000e+00> : vector<32x256xf32>
    %85 = tpu.matmul %84, %83, %cst_71 {dimension_numbers = #tpu.dot_dimension_numbers<[1], [0], [0], [1], [0, 0, 1, 1], [], []>} : vector<32x4xf32>, vector<4x256xf32>, vector<32x256xf32> -> vector<32x256xf32>
    %c0_72 = arith.constant 0 : index
    %c0_73 = arith.constant 0 : index
    %86 = vector.load %arg20[%c0_72, %c0_73] : memref<32x1xf32, #tpu.memory_space<vmem>>, vector<32x1xf32>
    %87 = vector.broadcast %86 : vector<32x1xf32> to vector<32x256xf32>
    %88 = arith.addf %85, %87 : vector<32x256xf32>
    %89 = arith.negf %88 : vector<32x256xf32>
    %90 = math.exp %89 : vector<32x256xf32>
    %cst_74 = arith.constant 1.000000e+00 : f32
    %91 = vector.broadcast %cst_74 : f32 to vector<32x256xf32>
    %92 = arith.addf %91, %90 : vector<32x256xf32>
    %93 = arith.divf %91, %92 : vector<32x256xf32>
    %c0_75 = arith.constant 0 : index
    %c0_76 = arith.constant 0 : index
    %c0_77 = arith.constant 0 : index
    %94 = vector.load %arg3[%c0_75, %c0_76, %c0_77] : memref<1x32x256xf32, #tpu.memory_space<vmem>>, vector<1x32x256xf32>
    %95 = vector.shape_cast %94 : vector<1x32x256xf32> to vector<32x256xf32>
    %96 = vector.broadcast %74 : vector<1x256xf32> to vector<32x256xf32>
    %97 = arith.mulf %96, %95 : vector<32x256xf32>
    %98 = arith.mulf %93, %97 : vector<32x256xf32>
    %c0_78 = arith.constant 0 : index
    %c0_79 = arith.constant 0 : index
    %c0_80 = arith.constant 0 : index
    %99 = vector.load %arg4[%c0_78, %c0_79, %c0_80] : memref<1x32x128xf32, #tpu.memory_space<vmem>>, vector<1x32x128xf32>
    %100 = vector.shape_cast %99 : vector<1x32x128xf32> to vector<32x128xf32>
    %101 = vector.extract_strided_slice %98 {offsets = [0, 0], sizes = [32, 128], strides = [1, 1]} : vector<32x256xf32> to vector<32x128xf32>
    %102 = vector.extract_strided_slice %98 {offsets = [0, 128], sizes = [32, 128], strides = [1, 1]} : vector<32x256xf32> to vector<32x128xf32>
    %103 = arith.addf %101, %102 : vector<32x128xf32>
    %cst_81 = arith.constant 0.000000e+00 : f32
    %104 = vector.broadcast %cst_81 : f32 to vector<32x128xf32>
    %105 = arith.maximumf %103, %104 : vector<32x128xf32>
    %106 = arith.addf %100, %105 : vector<32x128xf32>
    %c0_82 = arith.constant 0 : index
    %c0_83 = arith.constant 0 : index
    %c0_84 = arith.constant 0 : index
    %107 = vector.load %arg21[%c0_82, %c0_83, %c0_84] : memref<1x32x128xf32, #tpu.memory_space<vmem>>, vector<1x32x128xf32>
    %108 = vector.shape_cast %107 : vector<1x32x128xf32> to vector<32x128xf32>
    %109 = vector.shape_cast %106 : vector<32x128xf32> to vector<1x32x128xf32>
    tpu.vector_store %arg21[%c0_82, %c0_83, %c0_84], %109 {strides = array<i32>} : memref<1x32x128xf32, #tpu.memory_space<vmem>>, vector<1x32x128xf32>,
    return
  }
  func.func @transform_0(%arg0: i32) -> (i32, i32, i32) {
    %c0_i32 = arith.constant 0 : i32
    %c0_i32_0 = arith.constant 0 : i32
    %c0_i32_1 = arith.constant 0 : i32
    return %arg0, %c0_i32, %c0_i32_0 : i32, i32, i32
  }
  func.func @transform_1(%arg0: i32) -> (i32, i32, i32) {
    %c0_i32 = arith.constant 0 : i32
    %c0_i32_0 = arith.constant 0 : i32
    %c0_i32_1 = arith.constant 0 : i32
    return %arg0, %c0_i32, %c0_i32_0 : i32, i32, i32
  }
  func.func @transform_2(%arg0: i32) -> (i32, i32, i32) {
    %c0_i32 = arith.constant 0 : i32
    %c0_i32_0 = arith.constant 0 : i32
    %c0_i32_1 = arith.constant 0 : i32
    return %arg0, %c0_i32, %c0_i32_0 : i32, i32, i32
  }
  func.func @transform_3(%arg0: i32) -> (i32, i32, i32) {
    %c0_i32 = arith.constant 0 : i32
    %c0_i32_0 = arith.constant 0 : i32
    %c0_i32_1 = arith.constant 0 : i32
    return %arg0, %c0_i32, %c0_i32_0 : i32, i32, i32
  }
  func.func @transform_4(%arg0: i32) -> (i32, i32, i32) {
    %c0_i32 = arith.constant 0 : i32
    %c0_i32_0 = arith.constant 0 : i32
    %c0_i32_1 = arith.constant 0 : i32
    return %arg0, %c0_i32, %c0_i32_0 : i32, i32, i32
  }
  func.func @transform_5(%arg0: i32) -> (i32, i32) {
    %c0_i32 = arith.constant 0 : i32
    %c0_i32_0 = arith.constant 0 : i32
    %c0_i32_1 = arith.constant 0 : i32
    return %c0_i32, %c0_i32_0 : i32, i32
  }
  func.func @transform_6(%arg0: i32) -> (i32, i32) {
    %c0_i32 = arith.constant 0 : i32
    %c0_i32_0 = arith.constant 0 : i32
    %c0_i32_1 = arith.constant 0 : i32
    return %c0_i32, %c0_i32_0 : i32, i32
  }
  func.func @transform_7(%arg0: i32) -> (i32, i32) {
    %c0_i32 = arith.constant 0 : i32
    %c0_i32_0 = arith.constant 0 : i32
    %c0_i32_1 = arith.constant 0 : i32
    return %c0_i32, %c0_i32_0 : i32, i32
  }
  func.func @transform_8(%arg0: i32) -> (i32, i32) {
    %c0_i32 = arith.constant 0 : i32
    %c0_i32_0 = arith.constant 0 : i32
    %c0_i32_1 = arith.constant 0 : i32
    return %c0_i32, %c0_i32_0 : i32, i32
  }
  func.func @transform_9(%arg0: i32) -> (i32, i32) {
    %c0_i32 = arith.constant 0 : i32
    %c0_i32_0 = arith.constant 0 : i32
    %c0_i32_1 = arith.constant 0 : i32
    return %c0_i32, %c0_i32_0 : i32, i32
  }
  func.func @transform_10(%arg0: i32) -> (i32, i32) {
    %c0_i32 = arith.constant 0 : i32
    %c0_i32_0 = arith.constant 0 : i32
    %c0_i32_1 = arith.constant 0 : i32
    return %c0_i32, %c0_i32_0 : i32, i32
  }
  func.func @transform_11(%arg0: i32) -> (i32, i32) {
    %c0_i32 = arith.constant 0 : i32
    %c0_i32_0 = arith.constant 0 : i32
    %c0_i32_1 = arith.constant 0 : i32
    return %c0_i32, %c0_i32_0 : i32, i32
  }
  func.func @transform_12(%arg0: i32) -> (i32, i32) {
    %c0_i32 = arith.constant 0 : i32
    %c0_i32_0 = arith.constant 0 : i32
    %c0_i32_1 = arith.constant 0 : i32
    return %c0_i32, %c0_i32_0 : i32, i32
  }
  func.func @transform_13(%arg0: i32) -> (i32, i32) {
    %c0_i32 = arith.constant 0 : i32
    %c0_i32_0 = arith.constant 0 : i32
    %c0_i32_1 = arith.constant 0 : i32
    return %c0_i32, %c0_i32_0 : i32, i32
  }
  func.func @transform_14(%arg0: i32) -> (i32, i32) {
    %c0_i32 = arith.constant 0 : i32
    %c0_i32_0 = arith.constant 0 : i32
    %c0_i32_1 = arith.constant 0 : i32
    return %c0_i32, %c0_i32_0 : i32, i32
  }
  func.func @transform_15(%arg0: i32) -> (i32, i32) {
    %c0_i32 = arith.constant 0 : i32
    %c0_i32_0 = arith.constant 0 : i32
    %c0_i32_1 = arith.constant 0 : i32
    return %c0_i32, %c0_i32_0 : i32, i32
  }
  func.func @transform_16(%arg0: i32) -> (i32, i32) {
    %c0_i32 = arith.constant 0 : i32
    %c0_i32_0 = arith.constant 0 : i32
    %c0_i32_1 = arith.constant 0 : i32
    return %c0_i32, %c0_i32_0 : i32, i32
  }
  func.func @transform_17(%arg0: i32) -> (i32, i32) {
    %c0_i32 = arith.constant 0 : i32
    %c0_i32_0 = arith.constant 0 : i32
    %c0_i32_1 = arith.constant 0 : i32
    return %c0_i32, %c0_i32_0 : i32, i32
  }
  func.func @transform_18(%arg0: i32) -> (i32, i32) {
    %c0_i32 = arith.constant 0 : i32
    %c0_i32_0 = arith.constant 0 : i32
    %c0_i32_1 = arith.constant 0 : i32
    return %c0_i32, %c0_i32_0 : i32, i32
  }
  func.func @transform_19(%arg0: i32) -> (i32, i32) {
    %c0_i32 = arith.constant 0 : i32
    %c0_i32_0 = arith.constant 0 : i32
    %c0_i32_1 = arith.constant 0 : i32
    return %c0_i32, %c0_i32_0 : i32, i32
  }
  func.func @transform_20(%arg0: i32) -> (i32, i32, i32) {
    %c0_i32 = arith.constant 0 : i32
    %c0_i32_0 = arith.constant 0 : i32
    %c0_i32_1 = arith.constant 0 : i32
    return %arg0, %c0_i32, %c0_i32_0 : i32, i32, i32
  }
}

</mosaic_0001>

<bundles_post_ra>
// kernel: sra_forward.1
= control target key start
LH: loop header
LB: loop body
LE: loop exit
PB: predicated region body
PF: predicated region fallthrough
CT: control target
= control target key end

     0   :  { %s3831_s23 = smov 0   ;;  %s4337_s0 = inlined_call_operand.vmem [shape: bf16[2,32,256], index: 0, kind: input, shape index: {}]   ;;  %s4338_s1 = inlined_call_operand.vmem [shape: bf16[2,128,256], index: 1, kind: input, shape index: {}]   ;;  %s4339_s2 = inlined_call_operand.vmem [shape: f32[2,32,256], index: 2, kind: input, shape index: {}]   ;;  %s4340_s3 = inlined_call_operand.vmem [shape: f32[2,32,128], index: 3, kind: input, shape index: {}, may-alias: {3,20}]   ;;  %s4341_s4 = inlined_call_operand.vmem [shape: f32[2,32,256], index: 4, kind: input, shape index: {}]   ;;  %s4342_s5 = inlined_call_operand.vmem [shape: bf16[4,32], index: 5, kind: input, shape index: {}]   ;;  %s4343_s6 = inlined_call_operand.vmem [shape: f32[4,1], index: 6, kind: input, shape index: {}]   ;;  %s4344_s7 = inlined_call_operand.vmem [shape: bf16[4,32], index: 7, kind: input, shape index: {}]   ;;  %s4345_s8 = inlined_call_operand.vmem [shape: f32[4,1], index: 8, kind: input, shape index: {}]   ;;  %s4346_s9 = inlined_call_operand.vmem [shape: bf16[128,128], index: 9, kind: input, shape index: {}]   ;;  %s4347_s10 = inlined_call_operand.vmem [shape: f32[128,1], index: 10, kind: input, shape index: {}]   ;;  %s4348_s11 = inlined_call_operand.vmem [shape: bf16[128,128], index: 11, kind: input, shape index: {}]   ;;  %s4349_s12 = inlined_call_operand.vmem [shape: bf16[128,128], index: 12, kind: input, shape index: {}]   ;;  %s4350_s13 = inlined_call_operand.vmem [shape: f32[128,1], index: 13, kind: input, shape index: {}]   ;;  %s4351_s14 = inlined_call_operand.vmem [shape: bf16[1,128], index: 14, kind: input, shape index: {}]   ;;  %s4352_s15 = inlined_call_operand.<no memory space> [shape: f32[1,1], index: 15, kind: input, shape index: {}]   ;;  %s4353_s16 = inlined_call_operand.vmem [shape: f32[4,32], index: 16, kind: input, shape index: {}]   ;;  %s4354_s17 = inlined_call_operand.vmem [shape: f32[4,1], index: 17, kind: input, shape index: {}]   ;;  %s4355_s18 = inlined_call_operand.vmem [shape: f32[32,4], index: 18, kind: input, shape index: {}]   ;;  %s4356_s19 = inlined_call_operand.vmem [shape: f32[32,1], index: 19, kind: input, shape index: {}]   ;;  %s4357_s20 = inlined_call_operand.vmem [shape: f32[2,32,128], index: 20, kind: output, shape index: {}, may-alias: {3,20}]  }
   0x1   :  { %4358 = sst [smem:[#allocation4_spill]] %s4337_s0  ;;  %v25_v0 = vstv %s4352_s15 }
   0x2   :  { %4359 = sst [smem:[#allocation5_spill]] %s4338_s1  ;;  %26 = vst [vmem:[#allocation3] sm:$0x1] %v25_v0 }
   0x3   :  { %4360 = sst [smem:[#allocation6_spill]] %s4339_s2 }
   0x4   :  { %4361 = sst [smem:[#allocation7_spill]] %s4340_s3 }
   0x5   :  { %4362 = sst [smem:[#allocation8_spill]] %s4341_s4 }
   0x6 LB: > { %s3317_s24 = sadd.s32 4294967295, %s3718_s23   ;;  %p3321_p0 = scmp.ge.s32.totalorder %s3718_s23, 1  ;;  %s3718_s23 = sphi %s3831_s23, %s32_s23  }
   0x7   : > { %p604_p1 = scmp.lt.s32.totalorder %s3718_s23, 3 }
   0x9   : > { %p605_p2 = pnand %p3321_p0, %p604_p1 }
   0xa   : > { %p682_p3 = scmp.lt.s32.totalorder (!%p605_p2), %s3317_s24, 1  ;;  %v3720_v1 = vmov (!%p605_p2), 0   ;;  %v792_v2 = vld [vmem:[%s4345_s8] sm:$0xf] (!%p605_p2)  ;;  %s4363_s4 = sld [smem:[#allocation4_spill]] (!%p605_p2)  ;;  %vm744_vm0 = vcmask (!%p605_p2), 261120  }
   0xb   : > { %608 = sbr.rel (%p605_p2) target bundleno = 2016 (0x7e0), region = 100  ;;  %780 = vmatprep.mubr.bf16.mxu0 (!%p605_p2), %v3720_v1  ;;  %833 = vmatprep.mubr.bf16.mxu1 (!%p605_p2), %v3720_v1  ;;  %v718_v3 = vld [vmem:[%s4343_s6] sm:$0xf] (!%p605_p2)  ;;  %s4364_s1 = sld [smem:[#allocation5_spill]] (!%p605_p2)  ;;  %vm877_vm1 = vcmask (!%p605_p2), 1041408   ;;  %vm864_vm2 = vcmask (!%p605_p2), 31744  }
   0xc   : > { %3616 = vset.pattern.permute.xlu0 (!%p605_p2), %v3720_v1  ;;  %v717_v8 = vld [vmem:[%s4342_s5] sm:$0x3] (!%p605_p2)  ;;  %s3721_s27 = smov (!%p605_p2), 64   ;;  %vm1042_vm3 = vcmask (!%p605_p2), 523264   ;;  %vm1291_vm4 = vcmask (!%p605_p2), 1048064   ;;  %vm3018_vm5 = vcmask (!%p605_p2), 1043456  }
   0xd   : > { %795 = vperm.xlu0 (!%p605_p2), %3616, %v792_v2   ;;  %v791_v9 = vld [vmem:[%s4344_s7] sm:$0x3] (!%p605_p2)  ;;  %s4366_s21 = sld [smem:[#allocation6_spill]] (!%p605_p2)  ;;  %s4367_s2 = sld [smem:[#allocation7_spill]] (!%p605_p2) }
  0x11   : > { %721 = vperm.xlu0 (!%p605_p2), %3616, %v718_v3  }
  0x12   : > { %s4369_s24 = smov (!%p682_p3, %s3317_s24), 1 }
  0x13   : > { %s3851_s26 = sshll.u32 %s4369_s24, 5  ;;  %s3432_s30 = sshll.u32 %s4369_s24, 7 }
  0x14   : > { %s686_s29 = scalar_lea.vmem %s4363_s4, %s3851_s26  ;;  %s3861_s22 = scalar_lea.vmem %s4364_s1, %s3432_s30 }
  0x15   : > { %v3618_v4 = vld [vmem:[%s686_s29 + $0x4] ss:$8 sps:$4 sm:$0xff]   ;;  %v3620_v5 = vld [vmem:[%s686_s29] ss:$8 sps:$4 sm:$0xff]   ;;  %v3621_v6 = vld [vmem:[%s686_s29 + $0x14] ss:$8 sps:$4 sm:$0xff]   ;;  %s701_s25 = scalar_lea.vmem %s4367_s2, %s3851_s26  ;;  %s711_s4 = scalar_lea.vmem %s4357_s20, %s3851_s26 }
  0x16   : > { %748 = vmatprep.subr.bf16.mxu0 %v3618_v4  ;;  %801 = vmatprep.subr.bf16.mxu1 %v3618_v4  ;;  %v3623_v7 = vld [vmem:[%s686_s29 + $0x10] ss:$8 sps:$4 sm:$0xff]   ;;  %s3433_s28 = sshll.u32 %s4369_s24, 6  ;;  %s4365_s30 = sld [smem:[#allocation8_spill]] }
  0x17   : > { %749 = vmatpush1.bf16.msra.mxu0 %v3620_v5  ;;  %802 = vmatpush1.bf16.msra.mxu1 %v3620_v5  ;;  %s696_s1 = scalar_lea.vmem %s4366_s21, %s3433_s28 }
  0x18   : > { %750 = vmatprep.subr.bf16.mxu0 %v3621_v6  ;;  %803 = vmatprep.subr.bf16.mxu1 %v3621_v6 }
  0x1b   : > { %751 = vmatpush1.bf16.msra.mxu0 %v3623_v7  ;;  %804 = vmatpush1.bf16.msra.mxu1 %v3623_v7 }
  0x1c   : > { %s706_s0 = scalar_lea.vmem %s4365_s30, %s3433_s28 }
  0x1e   : > { %3338 = vmatmul.mubr.msk.bf16.vlgmr.msra.gmra.mrb[0].mxu0 %vm744_vm0, %v717_v8  ;;  %3339 = vmatmul.mubr.msk.bf16.vlgmr.msra.gmra.mrb[0].mxu1 %vm744_vm0, %v791_v9 }
  0x8c   : > { %v796_v10 = vpop.permute.xlu0 %795 }
  0x90   : > { %v722_v11 = vpop.permute.xlu0 %721 }
  0xf1   : > { %v782_v12 = vpop.f32.mrb[0].mxu0  ;;  %v835_v13 = vpop.f32.mrb[0].mxu1 }
  0xf2   : > { %v836_v14 = vadd.f32 %v835_v13, %v796_v10  ;;  %v783_v15 = vadd.f32 %v782_v12, %v722_v11  ;;  %v784_v16 = vpop.f32.mrb[1].mxu0  ;;  %v837_v17 = vpop.f32.mrb[1].mxu1 }
  0xf3   : > { %v838_v18 = vadd.f32 %v837_v17, %v796_v10  ;;  %v839_v19 = vpop.f32.mrb[2].mxu1  ;;  %v786_v20 = vpop.f32.mrb[2].mxu0  ;;  %v785_v30 = vadd.f32 %v784_v16, %v722_v11 }
  0xf4   : > { %v842_v21 = vmax.f32 %v836_v14, 0.0  ;;  %v789_v22 = vmax.f32 %v783_v15, 0.0  ;;  %v840_v23 = vpop.f32.mrb[3].mxu1  ;;  %v787_v24 = vpop.f32.mrb[3].mxu0 }
  0xf5   : > { %v843_v25 = vmax.f32 %v838_v18, 0.0  ;;  %v790_v31 = vmax.f32 %v785_v30, 0.0 }
  0xf6   : > { %v846_v26 = vpack.c.bf16 %v842_v21, %v842_v21  ;;  %v844_v27 = vpack.c.bf16 %v789_v22, %v789_v22 }
  0xf7   : > { %v3871_v28 = vpack.c.bf16 %v843_v25, %v843_v25  ;;  %v845_v32 = vpack.c.bf16 %v790_v31, %v790_v31 }
  0xf8   : > { %1080 = vrot.lane.b32.xlu1 %v846_v26, %s3721_s27  ;;  %3597 = vmatprep.subr.msk.bf16.mxu0 %vm877_vm1, %v846_v26  ;;  %v879_v29 = vsel %vm877_vm1, %v846_v26, 0  ;;  %v975_v40 = vsel %vm877_vm1, %v844_v27, 0 }
  0xf9   : > { %1569 = vrot.lane.b32.xlu0 %v3871_v28, %s3721_s27  ;;  %3478 = vmatpush3.bf16.msra.mxu0 %v879_v29  ;;  %v1465_v51 = vsel %vm877_vm1, %v845_v32, 0  ;;  %v1369_v54 = vsel %vm877_vm1, %v3871_v28, 0 }
  0xfa   : > { %3598 = vmatprep.subr.msk.bf16.mxu0 %vm877_vm1, %v844_v27 }
  0xfc   : > { %1060 = vrot.lane.b32.xlu1 %v844_v27, %s3721_s27 }
 0x117   : > { %946 = vxpose.xlu0.c.b16.start.end [1/1] (short) (narrow) %v846_v26, 64 }
 0x11f   : > { %848 = vxpose.xlu1.c.b16.start.end [1/1] (short) (narrow) %v844_v27, 64 }
 0x12c   : > { %1549 = vrot.lane.b32.xlu0 %v845_v32, %s3721_s27 }
 0x16a   : > { %v1081_v33 = vpop.permute.xlu1 %1080 }
 0x16b   : > { %1163 = vxpose.xlu1.c.b16.start.end [1/1] (short) (narrow) %v1081_v33, 64  ;;  %v1570_v36 = vpop.permute.xlu0 %1569  ;;  %v1095_v46 = vsel %vm877_vm1, %v1081_v33, 0 }
 0x16c   : > { %v1584_v0 = vsel %vm877_vm1, %v1570_v36, 0 }
 0x16e   : > { %v1061_v34 = vpop.permute.xlu1 %1060 }
 0x16f   : > { %3600 = vmatprep.subr.msk.bf16.mxu1 %vm877_vm1, %v1061_v34  ;;  %1063 = vxpose.xlu0.c.b16.start.end [1/1] (short) (narrow) %v1061_v34, 64  ;;  %v1192_v35 = vsel %vm877_vm1, %v1061_v34, 0 }
 0x170   : > { %3508 = vmatpush3.bf16.msra.mxu1 %v1192_v35 }
 0x171   : > { %3602 = vmatprep.subr.msk.bf16.mxu1 %vm877_vm1, %v845_v32 }
 0x178   : > { %1436 = vxpose.xlu1.c.b16.start.end [1/1] (short) (narrow) %v3871_v28, 64 }
 0x17c   : > { %1340 = vxpose.xlu0.c.b16.start.end [1/1] (short) (narrow) %v845_v32, 64 }
 0x17d   : > { %v954_v38 = vpop.trf.xlu0 }
 0x181   : > { %v955_v41 = vpop.trf.xlu0 }
 0x185   : > { %1652 = vxpose.xlu1.c.b16.start.end [1/1] (short) (narrow) %v1570_v36, 64  ;;  %v856_v37 = vpop.trf.xlu1  ;;  %v956_v44 = vpop.trf.xlu0 }
 0x186   : > { %3479 = vmatprep.mubr.msk.bf16.mxu0 %vm864_vm2, %v856_v37 }
 0x189   : > { %v857_v39 = vpop.trf.xlu1  ;;  %3617 = vset.pattern.permute.xlu1 %v3720_v1  ;;  %v957_v45 = vpop.trf.xlu0 }
 0x18a   : > { %3480 = vmatmul.mubr.msk.bf16.vlgmr.msra.gmra.mrb[4].mxu0 %vm864_vm2, %v857_v39 }
 0x18b   : > { %3488 = vmatpush3.bf16.msra.mxu0 %v975_v40 }
 0x18c   : > { %3599 = vmatprep.subr.msk.bf16.mxu0 %vm877_vm1, %v1081_v33 }
 0x18d   : > { %v858_v42 = vpop.trf.xlu1 }
 0x18e   : > { %3483 = vmatprep.mubr.msk.bf16.mxu0 %vm864_vm2, %v858_v42 }
 0x191   : > { %v859_v43 = vpop.trf.xlu1 }
 0x192   : > { %3484 = vmatmul.mubr.msk.bf16.gmra.mrb[8].mxu0 %vm864_vm2, %v859_v43 }
 0x193   : > { %3489 = vmatprep.mubr.msk.bf16.mxu0 %vm864_vm2, %v954_v38 }
 0x19a   : > { %3490 = vmatmul.mubr.msk.bf16.vlgmr.msra.gmra.mrb[12].mxu0 %vm864_vm2, %v955_v41 }
 0x19b   : > { %3498 = vmatpush3.bf16.msra.mxu0 %v1095_v46  ;;  %3493 = vmatprep.mubr.msk.bf16.mxu0 %vm864_vm2, %v956_v44 }
 0x19c   : > { %3601 = vmatprep.subr.msk.bf16.mxu0 %vm877_vm1, %v3871_v28 }
 0x19e   : > { %v1550_v47 = vpop.permute.xlu0 %1549 }
 0x19f   : > { %1552 = vxpose.xlu0.c.b16.start.end [1/1] (short) (narrow) %v1550_v47, 64  ;;  %v1681_v61 = vsel %vm877_vm1, %v1550_v47, 0 }
 0x1a2   : > { %3494 = vmatmul.mubr.msk.bf16.gmra.mrb[16].mxu0 %vm864_vm2, %v957_v45 }
 0x1d1   : > { %v1171_v48 = vpop.trf.xlu1 }
 0x1d2   : > { %3509 = vmatprep.mubr.msk.bf16.mxu1 %vm864_vm2, %v1171_v48 }
 0x1d5   : > { %v1071_v49 = vpop.trf.xlu0  ;;  %v1172_v50 = vpop.trf.xlu1 }
 0x1d6   : > { %3510 = vmatmul.mubr.msk.bf16.vlgmr.msra.gmra.mrb[4].mxu1 %vm864_vm2, %v1172_v50  ;;  %3499 = vmatprep.mubr.msk.bf16.mxu0 %vm864_vm2, %v1071_v49 }
 0x1d7   : > { %3528 = vmatpush3.bf16.msra.mxu1 %v1465_v51 }
 0x1d8   : > { %3604 = vmatprep.subr.msk.bf16.mxu1 %vm877_vm1, %v1550_v47 }
 0x1d9   : > { %v1072_v52 = vpop.trf.xlu0  ;;  %v1173_v53 = vpop.trf.xlu1 }
 0x1da   : > { %3500 = vmatmul.mubr.msk.bf16.vlgmr.msra.gmra.mrb[20].mxu0 %vm864_vm2, %v1072_v52  ;;  %3513 = vmatprep.mubr.msk.bf16.mxu1 %vm864_vm2, %v1173_v53 }
 0x1db   : > { %3518 = vmatpush3.bf16.msra.mxu0 %v1369_v54 }
 0x1dc   : > { %3603 = vmatprep.subr.msk.bf16.mxu0 %vm877_vm1, %v1570_v36 }
 0x1dd   : > { %v1073_v55 = vpop.trf.xlu0  ;;  %v1174_v56 = vpop.trf.xlu1 }
 0x1de   : > { %3514 = vmatmul.mubr.msk.bf16.gmra.mrb[8].mxu1 %vm864_vm2, %v1174_v56  ;;  %3503 = vmatprep.mubr.msk.bf16.mxu0 %vm864_vm2, %v1073_v55 }
 0x1e1   : > { %v1074_v57 = vpop.trf.xlu0  ;;  %v1444_v58 = vpop.trf.xlu1 }
 0x1e2   : > { %3504 = vmatmul.mubr.msk.bf16.gmra.mrb[24].mxu0 %vm864_vm2, %v1074_v57  ;;  %3529 = vmatprep.mubr.msk.bf16.mxu1 %vm864_vm2, %v1444_v58 }
 0x1e5   : > { %v1348_v59 = vpop.trf.xlu0  ;;  %v1445_v60 = vpop.trf.xlu1 }
 0x1e6   : > { %3530 = vmatmul.mubr.msk.bf16.vlgmr.msra.gmra.mrb[12].mxu1 %vm864_vm2, %v1445_v60  ;;  %3519 = vmatprep.mubr.msk.bf16.mxu0 %vm864_vm2, %v1348_v59 }
 0x1e7   : > { %3548 = vmatpush3.bf16.msra.mxu1 %v1681_v61 }
 0x1e9   : > { %v1349_v62 = vpop.trf.xlu0  ;;  %v1446_v63 = vpop.trf.xlu1 }
 0x1ea   : > { %3520 = vmatmul.mubr.msk.bf16.vlgmr.msra.gmra.mrb[28].mxu0 %vm864_vm2, %v1349_v62  ;;  %3533 = vmatprep.mubr.msk.bf16.mxu1 %vm864_vm2, %v1446_v63 }
 0x1eb   : > { %3538 = vmatpush3.bf16.msra.mxu0 %v1584_v0 }
 0x1ed   : > { %v1447_v2 = vpop.trf.xlu1  ;;  %v1350_v3 = vpop.trf.xlu0 }
 0x1ee   : > { %3534 = vmatmul.mubr.msk.bf16.gmra.mrb[16].mxu1 %vm864_vm2, %v1447_v2  ;;  %3523 = vmatprep.mubr.msk.bf16.mxu0 %vm864_vm2, %v1350_v3 }
 0x1f1   : > { %v1660_v4 = vpop.trf.xlu1  ;;  %v1351_v5 = vpop.trf.xlu0 }
 0x1f2   : > { %3524 = vmatmul.mubr.msk.bf16.gmra.mrb[32].mxu0 %vm864_vm2, %v1351_v5  ;;  %3549 = vmatprep.mubr.msk.bf16.mxu1 %vm864_vm2, %v1660_v4 }
 0x1f5   : > { %v1661_v6 = vpop.trf.xlu1 }
 0x1f6   : > { %3550 = vmatmul.mubr.msk.bf16.vlgmr.msra.gmra.mrb[20].mxu1 %vm864_vm2, %v1661_v6 }
 0x1f9   : > { %v1662_v7 = vpop.trf.xlu1 }
 0x1fa   : > { %3553 = vmatprep.mubr.msk.bf16.mxu1 %vm864_vm2, %v1662_v7 }
 0x1fd   : > { %v1663_v8 = vpop.trf.xlu1 }
 0x1fe   : > { %3554 = vmatmul.mubr.msk.bf16.gmra.mrb[24].mxu1 %vm864_vm2, %v1663_v8 }
 0x1ff   : > { %2325 = vmatprep.mubr.bf16.mxu1 %v3720_v1 }
 0x205   : > { %v1560_v9 = vpop.trf.xlu0 }
 0x206   : > { %3539 = vmatprep.mubr.msk.bf16.mxu0 %vm864_vm2, %v1560_v9 }
 0x209   : > { %v1561_v10 = vpop.trf.xlu0 }
 0x20a   : > { %3540 = vmatmul.mubr.msk.bf16.vlgmr.msra.gmra.mrb[36].mxu0 %vm864_vm2, %v1561_v10 }
 0x20d   : > { %v1562_v11 = vpop.trf.xlu0 }
 0x20e   : > { %3543 = vmatprep.mubr.msk.bf16.mxu0 %vm864_vm2, %v1562_v11 }
 0x211   : > { %v1563_v12 = vpop.trf.xlu0 }
 0x212   : > { %3544 = vmatmul.mubr.msk.bf16.gmra.mrb[40].mxu0 %vm864_vm2, %v1563_v12 }
 0x213   : > { %2068 = vmatprep.mubr.bf16.mxu0 %v3720_v1 }
 0x25d   : > { %v3481_v13 = vpop.f32.mrb[4].mxu0 }
 0x25e   : > { %1053 = vst.msk [vmem:[#allocation2 + $0xa0] sm:$0xff] %vm1042_vm3, %v3481_v13  ;;  %v915_v14 = vpop.f32.mrb[5].mxu0 }
 0x25f   : > { %1051 = vst.msk [vmem:[#allocation2 + $0x80] sm:$0xff] %vm1042_vm3, %v915_v14  ;;  %v3482_v15 = vpop.f32.mrb[6].mxu0  ;;  %v1892_v14 = vld [vmem:[%s4347_s10] sm:$0xff] }
 0x260   : > { %1054 = vst.msk [vmem:[#allocation2 + $0xb0] sm:$0xff] %vm1042_vm3, %v3482_v15  ;;  %v918_v16 = vpop.f32.mrb[7].mxu0  ;;  %v1894_v15 = vld [vmem:[%s4347_s10 + $0x10] sm:$0xff] }
 0x261   : > { %1052 = vst.msk [vmem:[#allocation2 + $0x90] sm:$0xff] %vm1042_vm3, %v918_v16  ;;  %v1896_v16 = vld [vmem:[%s4347_s10 + $0x20] sm:$0xff] }
 0x265   : > { %v3485_v17 = vpop.f32.mrb[8].mxu0 }
 0x266   : > { %1057 = vst.msk [vmem:[#allocation2 + $0xe0] sm:$0xff] %vm1042_vm3, %v3485_v17  ;;  %v931_v18 = vpop.f32.mrb[9].mxu0  ;;  %v1898_v17 = vld [vmem:[%s4347_s10 + $0x30] sm:$0xff] }
 0x267   : > { %1055 = vst.msk [vmem:[#allocation2 + $0xc0] sm:$0xff] %vm1042_vm3, %v931_v18  ;;  %v3486_v19 = vpop.f32.mrb[10].mxu0  ;;  %v1900_v18 = vld [vmem:[%s4347_s10 + $0x40] sm:$0xff] }
 0x268   : > { %1058 = vst.msk [vmem:[#allocation2 + $0xf0] sm:$0xff] %vm1042_vm3, %v3486_v19  ;;  %v934_v20 = vpop.f32.mrb[11].mxu0  ;;  %v1902_v19 = vld [vmem:[%s4347_s10 + $0x50] sm:$0xff] }
 0x269   : > { %1056 = vst.msk [vmem:[#allocation2 + $0xd0] sm:$0xff] %vm1042_vm3, %v934_v20  ;;  %v1904_v20 = vld [vmem:[%s4347_s10 + $0x60] sm:$0xff] }
 0x26d   : > { %v3491_v21 = vpop.f32.mrb[12].mxu0 }
 0x26e   : > { %1045 = vst.msk [vmem:[#allocation2 + $0x20] sm:$0xff] %vm1042_vm3, %v3491_v21  ;;  %v1011_v22 = vpop.f32.mrb[13].mxu0 }
 0x26f   : > { %1043 = vst.msk [vmem:[#allocation2] sm:$0xff] %vm1042_vm3, %v1011_v22  ;;  %v3492_v23 = vpop.f32.mrb[14].mxu0 }
 0x270   : > { %1046 = vst.msk [vmem:[#allocation2 + $0x30] sm:$0xff] %vm1042_vm3, %v3492_v23  ;;  %v1014_v24 = vpop.f32.mrb[15].mxu0  ;;  %v1906_v23 = vld [vmem:[%s4347_s10 + $0x70] sm:$0xff] }
 0x271   : > { %1044 = vst.msk [vmem:[#allocation2 + $0x10] sm:$0xff] %vm1042_vm3, %v1014_v24 }
 0x275   : > { %v3495_v25 = vpop.f32.mrb[16].mxu0 }
 0x276   : > { %1049 = vst.msk [vmem:[#allocation2 + $0x60] sm:$0xff] %vm1042_vm3, %v3495_v25  ;;  %v1027_v26 = vpop.f32.mrb[17].mxu0 }
 0x277   : > { %1047 = vst.msk [vmem:[#allocation2 + $0x40] sm:$0xff] %vm1042_vm3, %v1027_v26  ;;  %v3496_v27 = vpop.f32.mrb[18].mxu0  ;;  %v2647_v26 = vld [vmem:[%s4350_s13] sm:$0xff] }
 0x278   : > { %1050 = vst.msk [vmem:[#allocation2 + $0x70] sm:$0xff] %vm1042_vm3, %v3496_v27  ;;  %v1030_v28 = vpop.f32.mrb[19].mxu0 }
 0x279   : > { %1048 = vst.msk [vmem:[#allocation2 + $0x50] sm:$0xff] %vm1042_vm3, %v1030_v28 }
 0x2a9   : > { %v3511_v29 = vpop.f32.mrb[4].mxu1 }
 0x2aa   : > { %v1228_v30 = vpop.f32.mrb[5].mxu1  ;;  %1271 = vrot.lane.b32.xlu0 %v3511_v29, %s3721_s27  ;;  %v2649_v29 = vld [vmem:[%s4350_s13 + $0x10] sm:$0xff] }
 0x2ab   : > { %1267 = vrot.lane.b32.xlu1 %v1228_v30, %s3721_s27  ;;  %v3512_v31 = vpop.f32.mrb[6].mxu1 }
 0x2ac   : > { %v1231_v32 = vpop.f32.mrb[7].mxu1 }
 0x2ad   : > { %v3950_v33 = vpop.f32.mrb[20].mxu0 }
 0x2ae   : > { %v1131_v34 = vpop.f32.mrb[21].mxu0 }
 0x2af   : > { %1273 = vrot.lane.b32.xlu1 %v3512_v31, %s3721_s27  ;;  %v3953_v35 = vpop.f32.mrb[22].mxu0  ;;  %1308 = vrot.lane.b32.xlu0 %v1131_v34, %s3721_s27  ;;  %v1893_v34 = vld [vmem:[%s4347_s10 + $0x8] sm:$0xff] }
 0x2b0   : > { %v1134_v36 = vpop.f32.mrb[23].mxu0 }
 0x2b1   : > { %v3515_v37 = vpop.f32.mrb[8].mxu1 }
 0x2b2   : > { %v1244_v38 = vpop.f32.mrb[9].mxu1 }
 0x2b3   : > { %1269 = vrot.lane.b32.xlu1 %v1231_v32, %s3721_s27  ;;  %v3516_v39 = vpop.f32.mrb[10].mxu1  ;;  %1279 = vrot.lane.b32.xlu0 %v3515_v37, %s3721_s27  ;;  %v2651_v32 = vld [vmem:[%s4350_s13 + $0x20] sm:$0xff]  ;;  %v1895_v37 = vld [vmem:[%s4347_s10 + $0x18] sm:$0xff] }
 0x2b4   : > { %v1247_v40 = vpop.f32.mrb[11].mxu1 }
 0x2b5   : > { %v3958_v41 = vpop.f32.mrb[24].mxu0 }
 0x2b6   : > { %v3960_v42 = vpop.f32.mrb[25].mxu0 }
 0x2b7   : > { %1310 = vrot.lane.b32.xlu1 %v1134_v36, %s3721_s27  ;;  %1275 = vrot.lane.b32.xlu0 %v1244_v38, %s3721_s27  ;;  %v3964_v43 = vpop.f32.mrb[26].mxu0  ;;  %v2655_v38 = vld [vmem:[%s4350_s13 + $0x40] sm:$0xff] }
 0x2b8   : > { %v3966_v44 = vpop.f32.mrb[27].mxu0 }
 0x2b9   : > { %v3531_v45 = vpop.f32.mrb[12].mxu1 }
 0x2ba   : > { %1534 = vst.msk [vmem:[#allocation2 + $0x28] sm:$0xff] %vm1042_vm3, %v3531_v45  ;;  %v1501_v46 = vpop.f32.mrb[13].mxu1  ;;  %v1901_v45 = vld [vmem:[%s4347_s10 + $0x48] sm:$0xff] }
 0x2bb   : > { %1281 = vrot.lane.b32.xlu1 %v3516_v39, %s3721_s27  ;;  %1532 = vst.msk [vmem:[#allocation2 + $0x8] sm:$0xff] %vm1042_vm3, %v1501_v46  ;;  %v3532_v47 = vpop.f32.mrb[14].mxu1  ;;  %v1897_v39 = vld [vmem:[%s4347_s10 + $0x28] sm:$0xff]  ;;  %v2661_v46 = vld [vmem:[%s4350_s13 + $0x70] sm:$0xff] }
 0x2bc   : > { %1535 = vst.msk [vmem:[#allocation2 + $0x38] sm:$0xff] %vm1042_vm3, %v3532_v47  ;;  %v1504_v48 = vpop.f32.mrb[15].mxu1 }
 0x2bd   : > { %1533 = vst.msk [vmem:[#allocation2 + $0x18] sm:$0xff] %vm1042_vm3, %v1504_v48  ;;  %v3521_v49 = vpop.f32.mrb[28].mxu0  ;;  %v1903_v48 = vld [vmem:[%s4347_s10 + $0x58] sm:$0xff] }
 0x2be   : > { %1542 = vst.msk [vmem:[#allocation2 + $0xa8] sm:$0xff] %vm1042_vm3, %v3521_v49  ;;  %v1405_v50 = vpop.f32.mrb[29].mxu0  ;;  %v2896_v49 = vld [vmem:[%s4354_s17] sm:$0xf] }
 0x2bf   : > { %1277 = vrot.lane.b32.xlu1 %v1247_v40, %s3721_s27  ;;  %1540 = vst.msk [vmem:[#allocation2 + $0x88] sm:$0xff] %vm1042_vm3, %v1405_v50  ;;  %v3522_v51 = vpop.f32.mrb[30].mxu0  ;;  %v2657_v40 = vld [vmem:[%s4350_s13 + $0x50] sm:$0xff]  ;;  %v1905_v50 = vld [vmem:[%s4347_s10 + $0x68] sm:$0xff] }
 0x2c0   : > { %1543 = vst.msk [vmem:[#allocation2 + $0xb8] sm:$0xff] %vm1042_vm3, %v3522_v51  ;;  %v1408_v52 = vpop.f32.mrb[31].mxu0  ;;  %v2982_v51 = vld [vmem:[%s4356_s19] sm:$0xff] }
 0x2c1   : > { %1541 = vst.msk [vmem:[#allocation2 + $0x98] sm:$0xff] %vm1042_vm3, %v1408_v52  ;;  %v3535_v53 = vpop.f32.mrb[16].mxu1  ;;  %v1907_v52 = vld [vmem:[%s4347_s10 + $0x78] sm:$0xff] }
 0x2c2   : > { %1538 = vst.msk [vmem:[#allocation2 + $0x68] sm:$0xff] %vm1042_vm3, %v3535_v53  ;;  %v1517_v54 = vpop.f32.mrb[17].mxu1  ;;  %v2984_v53 = vld [vmem:[%s4356_s19 + $0x10] sm:$0xff] }
 0x2c3   : > { %1536 = vst.msk [vmem:[#allocation2 + $0x48] sm:$0xff] %vm1042_vm3, %v1517_v54  ;;  %v3536_v55 = vpop.f32.mrb[18].mxu1  ;;  %v2648_v54 = vld [vmem:[%s4350_s13 + $0x8] sm:$0xff] }
 0x2c4   : > { %1539 = vst.msk [vmem:[#allocation2 + $0x78] sm:$0xff] %vm1042_vm3, %v3536_v55  ;;  %v1520_v56 = vpop.f32.mrb[19].mxu1  ;;  %v2650_v55 = vld [vmem:[%s4350_s13 + $0x18] sm:$0xff] }
 0x2c5   : > { %1537 = vst.msk [vmem:[#allocation2 + $0x58] sm:$0xff] %vm1042_vm3, %v1520_v56  ;;  %v3525_v57 = vpop.f32.mrb[32].mxu0 }
 0x2c6   : > { %1546 = vst.msk [vmem:[#allocation2 + $0xe8] sm:$0xff] %vm1042_vm3, %v3525_v57  ;;  %v1421_v58 = vpop.f32.mrb[33].mxu0 }
 0x2c7   : > { %1544 = vst.msk [vmem:[#allocation2 + $0xc8] sm:$0xff] %vm1042_vm3, %v1421_v58  ;;  %v3526_v59 = vpop.f32.mrb[34].mxu0  ;;  %v2652_v58 = vld [vmem:[%s4350_s13 + $0x28] sm:$0xff] }
 0x2c8   : > { %1547 = vst.msk [vmem:[#allocation2 + $0xf8] sm:$0xff] %vm1042_vm3, %v3526_v59  ;;  %v1424_v60 = vpop.f32.mrb[35].mxu0 }
 0x2c9   : > { %v3551_v61 = vpop.f32.mrb[20].mxu1  ;;  %1545 = vst.msk [vmem:[#allocation2 + $0xd8] sm:$0xff] %vm1042_vm3, %v1424_v60 }
 0x2ca   : > { %v1717_v62 = vpop.f32.mrb[21].mxu1  ;;  %1760 = vrot.lane.b32.xlu0 %v3551_v61, %s3721_s27  ;;  %v2654_v61 = vld [vmem:[%s4350_s13 + $0x38] sm:$0xff] }
 0x2cb   : > { %1756 = vrot.lane.b32.xlu1 %v1717_v62, %s3721_s27  ;;  %v3552_v63 = vpop.f32.mrb[22].mxu1 }
 0x2cc   : > { %v1720_v0 = vpop.f32.mrb[23].mxu1 }
 0x2cf   : > { %1762 = vrot.lane.b32.xlu1 %v3552_v63, %s3721_s27 }
 0x2d1   : > { %v3555_v2 = vpop.f32.mrb[24].mxu1 }
 0x2d2   : > { %v1733_v3 = vpop.f32.mrb[25].mxu1 }
 0x2d3   : > { %v3556_v4 = vpop.f32.mrb[26].mxu1 }
 0x2d4   : > { %v1736_v5 = vpop.f32.mrb[27].mxu1 }
 0x2dd   : > { %v3541_v6 = vpop.f32.mrb[36].mxu0 }
 0x2de   : > { %v1620_v7 = vpop.f32.mrb[37].mxu0 }
 0x2df   : > { %1796 = vrot.lane.b32.xlu0 %v1620_v7, %s3721_s27  ;;  %v3542_v8 = vpop.f32.mrb[38].mxu0 }
 0x2e0   : > { %v1623_v9 = vpop.f32.mrb[39].mxu0 }
 0x2e1   : > { %1798 = vrot.lane.b32.xlu1 %v1623_v9, %s3721_s27 }
 0x2e3   : > { %1758 = vrot.lane.b32.xlu0 %v1720_v0, %s3721_s27 }
 0x2e5   : > { %1770 = vrot.lane.b32.xlu1 %v3556_v4, %s3721_s27  ;;  %v3545_v10 = vpop.f32.mrb[40].mxu0  ;;  %v2656_v4 = vld [vmem:[%s4350_s13 + $0x48] sm:$0xff] }
 0x2e6   : > { %v1636_v11 = vpop.f32.mrb[41].mxu0 }
 0x2e7   : > { %1768 = vrot.lane.b32.xlu0 %v3555_v2, %s3721_s27  ;;  %v3546_v12 = vpop.f32.mrb[42].mxu0 }
 0x2e8   : > { %v1639_v13 = vpop.f32.mrb[43].mxu0 }
 0x2e9   : > { %1766 = vrot.lane.b32.xlu1 %v1736_v5, %s3721_s27 }
 0x2eb   : > { %1764 = vrot.lane.b32.xlu0 %v1733_v3, %s3721_s27 }
 0x2ed   : > { %1802 = vrot.lane.b32.xlu1 %v3542_v8, %s3721_s27 }
 0x2ef   : > { %1800 = vrot.lane.b32.xlu0 %v3541_v6, %s3721_s27 }
 0x2f1   : > { %1314 = vrot.lane.b32.xlu1 %v3953_v35, %s3721_s27  ;;  %v2653_v35 = vld [vmem:[%s4350_s13 + $0x30] sm:$0xff] }
 0x2f3   : > { %1312 = vrot.lane.b32.xlu0 %v3950_v33, %s3721_s27 }
 0x2f5   : > { %1318 = vrot.lane.b32.xlu1 %v3966_v44, %s3721_s27 }
 0x2f7   : > { %1804 = vrot.lane.b32.xlu0 %v1636_v11, %s3721_s27 }
 0x2f9   : > { %1806 = vrot.lane.b32.xlu1 %v1639_v13, %s3721_s27 }
 0x2fb   : > { %1316 = vrot.lane.b32.xlu0 %v3960_v42, %s3721_s27  ;;  %v2659_v42 = vld [vmem:[%s4350_s13 + $0x60] sm:$0xff] }
 0x2fd   : > { %1810 = vrot.lane.b32.xlu1 %v3546_v12, %s3721_s27 }
 0x2ff   : > { %1808 = vrot.lane.b32.xlu0 %v3545_v10, %s3721_s27 }
 0x301   : > { %1322 = vrot.lane.b32.xlu1 %v3964_v43, %s3721_s27 }
 0x303   : > { %1320 = vrot.lane.b32.xlu0 %v3958_v41, %s3721_s27  ;;  %v1899_v41 = vld [vmem:[%s4347_s10 + $0x38] sm:$0xff] }
 0x305   : > { %1915 = vperm.xlu1 %3617, %v1893_v34  }
 0x307   : > { %1910 = vperm.xlu0 %3616, %v1892_v14  }
 0x309   : > { %1925 = vperm.xlu1 %3617, %v1895_v37  }
 0x30b   : > { %1920 = vperm.xlu0 %3616, %v1894_v15   ;;  %v2658_v15 = vld [vmem:[%s4350_s13 + $0x58] sm:$0xff] }
 0x30d   : > { %1935 = vperm.xlu1 %3617, %v1897_v39  }
 0x30f   : > { %1930 = vperm.xlu0 %3616, %v1896_v16  }
 0x311   : > { %1945 = vperm.xlu1 %3617, %v1899_v41  }
 0x313   : > { %1940 = vperm.xlu0 %3616, %v1898_v17  }
 0x315   : > { %1955 = vperm.xlu1 %3617, %v1901_v45  }
 0x317   : > { %1950 = vperm.xlu0 %3616, %v1900_v18  }
 0x319   : > { %1965 = vperm.xlu1 %3617, %v1903_v48  }
 0x31b   : > { %1960 = vperm.xlu0 %3616, %v1902_v19  }
 0x31c   : > { %v1272_v21 = vpop.permute.xlu0 %1271 }
 0x31d   : > { %v1268_v22 = vpop.permute.xlu1 %1267  ;;  %1294 = vst.msk [vmem:[#allocation2 + $0x20] sm:$0xff] %vm1291_vm4, %v1272_v21  ;;  %1975 = vperm.xlu1 %3617, %v1905_v50   ;;  %v2660_v21 = vld [vmem:[%s4350_s13 + $0x68] sm:$0xff] }
 0x31e   : > { %1292 = vst.msk [vmem:[#allocation2] sm:$0xff] %vm1291_vm4, %v1268_v22  ;;  %v2983_v50 = vld [vmem:[%s4356_s19 + $0x8] sm:$0xff] }
 0x31f   : > { %1970 = vperm.xlu0 %3616, %v1904_v20  }
 0x321   : > { %v1274_v24 = vpop.permute.xlu1 %1273  ;;  %v1309_v25 = vpop.permute.xlu0 %1308  ;;  %1985 = vperm.xlu1 %3617, %v1907_v52  }
 0x322   : > { %1295 = vst.msk [vmem:[#allocation2 + $0x30] sm:$0xff] %vm1291_vm4, %v1274_v24  ;;  %1332 = vst.msk [vmem:[#allocation2 + $0x80] sm:$0xff] %vm1291_vm4, %v1309_v25 }
 0x323   : > { %1980 = vperm.xlu0 %3616, %v1906_v23  }
 0x324   : > { %v1848_v13 = vld [vmem:[#allocation2 + $0x20] sm:$0xff] }
 0x325   : > { %v1270_v27 = vpop.permute.xlu1 %1269  ;;  %v1280_v28 = vpop.permute.xlu0 %1279  ;;  %2670 = vperm.xlu1 %3617, %v2648_v54   ;;  %v1844_v0 = vld [vmem:[#allocation2] sm:$0xff] }
 0x326   : > { %1293 = vst.msk [vmem:[#allocation2 + $0x10] sm:$0xff] %vm1291_vm4, %v1270_v27  ;;  %1298 = vst.msk [vmem:[#allocation2 + $0x60] sm:$0xff] %vm1291_vm4, %v1280_v28 }
 0x327   : > { %2665 = vperm.xlu0 %3616, %v2647_v26  }
 0x329   : > { %v1311_v30 = vpop.permute.xlu1 %1310  ;;  %v1276_v31 = vpop.permute.xlu0 %1275  ;;  %2680 = vperm.xlu1 %3617, %v2650_v55   ;;  %v1850_v14 = vld [vmem:[#allocation2 + $0x30] sm:$0xff] }
 0x32a   : > { %1333 = vst.msk [vmem:[#allocation2 + $0x90] sm:$0xff] %vm1291_vm4, %v1311_v30  ;;  %1296 = vst.msk [vmem:[#allocation2 + $0x40] sm:$0xff] %vm1291_vm4, %v1276_v31  ;;  %v1878_v18 = vpack.c.bf16 %v1850_v14, %v1848_v13  ;;  %v3631_v13 = vld [vmem:[%s4346_s9 + $0x38] sm:$0xff]  }
 0x32b   : > { %2675 = vperm.xlu0 %3616, %v2649_v29  }
 0x32d   : > { %v1282_v33 = vpop.permute.xlu1 %1281  ;;  %2690 = vperm.xlu1 %3617, %v2652_v58   ;;  %v1846_v2 = vld [vmem:[#allocation2 + $0x10] sm:$0xff]  ;;  %v1856_v31 = vld [vmem:[#allocation2 + $0x60] sm:$0xff]  ;;  %v2985_v58 = vld [vmem:[%s4356_s19 + $0x18] sm:$0xff] }
 0x32e   : > { %1299 = vst.msk [vmem:[#allocation2 + $0x70] sm:$0xff] %vm1291_vm4, %v1282_v33  ;;  %v1876_v11 = vpack.c.bf16 %v1846_v2, %v1844_v0  ;;  %v2662_v33 = vld [vmem:[%s4350_s13 + $0x78] sm:$0xff] }
 0x32f   : > { %2685 = vperm.xlu0 %3616, %v2651_v32  }
 0x331   : > { %v1278_v36 = vpop.permute.xlu1 %1277  ;;  %2700 = vperm.xlu1 %3617, %v2654_v61   ;;  %v1852_v19 = vld [vmem:[#allocation2 + $0x40] sm:$0xff]  ;;  %v1862_v41 = vld [vmem:[#allocation2 + $0x90] sm:$0xff] }
 0x332   : > { %1297 = vst.msk [vmem:[#allocation2 + $0x50] sm:$0xff] %vm1291_vm4, %v1278_v36 }
 0x333   : > { %2695 = vperm.xlu0 %3616, %v2653_v35  }
 0x335   : > { %2710 = vperm.xlu1 %3617, %v2656_v4   ;;  %v1858_v32 = vld [vmem:[#allocation2 + $0x70] sm:$0xff] }
 0x336   : > { %v1882_v37 = vpack.c.bf16 %v1858_v32, %v1856_v31 }
 0x337   : > { %2705 = vperm.xlu0 %3616, %v2655_v38  }
 0x339   : > { %2720 = vperm.xlu1 %3617, %v2658_v15   ;;  %v1854_v20 = vld [vmem:[#allocation2 + $0x50] sm:$0xff] }
 0x33a   : > { %v1880_v28 = vpack.c.bf16 %v1854_v20, %v1852_v19 }
 0x33b   : > { %2715 = vperm.xlu0 %3616, %v2657_v40   ;;  %v1860_v40 = vld [vmem:[#allocation2 + $0x80] sm:$0xff] }
 0x33c   : > { %v1761_v43 = vpop.permute.xlu0 %1760 }
 0x33d   : > { %v1757_v44 = vpop.permute.xlu1 %1756  ;;  %1782 = vst.msk [vmem:[#allocation2 + $0x28] sm:$0xff] %vm1291_vm4, %v1761_v43  ;;  %2730 = vperm.xlu1 %3617, %v2660_v21  }
 0x33e   : > { %1780 = vst.msk [vmem:[#allocation2 + $0x8] sm:$0xff] %vm1291_vm4, %v1757_v44 }
 0x33f   : > { %2725 = vperm.xlu0 %3616, %v2659_v42   ;;  %v2824_v42 = vld [vmem:[#allocation3] sm:$0x1] }
 0x341   : > { %v1763_v47 = vpop.permute.xlu1 %1762  ;;  %2740 = vperm.xlu1 %3617, %v2662_v33  }
 0x342   : > { %1783 = vst.msk [vmem:[#allocation2 + $0x38] sm:$0xff] %vm1291_vm4, %v1763_v47 }
 0x343   : > { %2735 = vperm.xlu0 %3616, %v2661_v46   ;;  %v1884_v46 = vpack.c.bf16 %v1862_v41, %v1860_v40 }
 0x344   : > { %v1849_v3 = vld [vmem:[#allocation2 + $0x28] sm:$0xff] }
 0x345   : > { %v1845_v6 = vld [vmem:[#allocation2 + $0x8] sm:$0xff]  ;;  %2827 = vperm.xlu1 %3617, %v2824_v42  }
 0x347   : > { %2899 = vperm.xlu0 %3616, %v2896_v49  }
 0x349   : > { %v1851_v8 = vld [vmem:[#allocation2 + $0x38] sm:$0xff]  ;;  %2993 = vperm.xlu1 %3617, %v2983_v50  }
 0x34a   : > { %v1879_v12 = vpack.c.bf16 %v1851_v8, %v1849_v3  ;;  %v3626_v8 = vld [vmem:[%s4346_s9 + $0x10] sm:$0xff]  }
 0x34b   : > { %2988 = vperm.xlu0 %3616, %v2982_v51  }
 0x34d   : > { %3003 = vperm.xlu1 %3617, %v2985_v58  }
 0x34f   : > { %2998 = vperm.xlu0 %3616, %v2984_v53  }
 0x351   : > { %v1797_v56 = vpop.permute.xlu0 %1796 }
 0x352   : > { %1820 = vst.msk [vmem:[#allocation2 + $0x88] sm:$0xff] %vm1291_vm4, %v1797_v56 }
 0x353   : > { %v1799_v57 = vpop.permute.xlu1 %1798 }
 0x354   : > { %1821 = vst.msk [vmem:[#allocation2 + $0x98] sm:$0xff] %vm1291_vm4, %v1799_v57 }
 0x355   : > { %v1759_v59 = vpop.permute.xlu0 %1758 }
 0x356   : > { %1781 = vst.msk [vmem:[#allocation2 + $0x18] sm:$0xff] %vm1291_vm4, %v1759_v59 }
 0x357   : > { %v1771_v60 = vpop.permute.xlu1 %1770 }
 0x358   : > { %1787 = vst.msk [vmem:[#allocation2 + $0x78] sm:$0xff] %vm1291_vm4, %v1771_v60 }
 0x359   : > { %v1769_v62 = vpop.permute.xlu0 %1768  ;;  %v1861_v38 = vld [vmem:[#allocation2 + $0x88] sm:$0xff] }
 0x35a   : > { %1786 = vst.msk [vmem:[#allocation2 + $0x68] sm:$0xff] %vm1291_vm4, %v1769_v62 }
 0x35b   : > { %v1767_v63 = vpop.permute.xlu1 %1766  ;;  %v1863_v35 = vld [vmem:[#allocation2 + $0x98] sm:$0xff] }
 0x35c   : > { %1785 = vst.msk [vmem:[#allocation2 + $0x58] sm:$0xff] %vm1291_vm4, %v1767_v63  ;;  %v1885_v39 = vpack.c.bf16 %v1863_v35, %v1861_v38 }
 0x35d   : > { %v1765_v5 = vpop.permute.xlu0 %1764  ;;  %v1847_v7 = vld [vmem:[#allocation2 + $0x18] sm:$0xff] }
 0x35e   : > { %1784 = vst.msk [vmem:[#allocation2 + $0x48] sm:$0xff] %vm1291_vm4, %v1765_v5  ;;  %v1877_v9 = vpack.c.bf16 %v1847_v7, %v1845_v6  ;;  %v3624_v6 = vld [vmem:[%s4346_s9] sm:$0xff]   ;;  %v3625_v7 = vld [vmem:[%s4346_s9 + $0x8] sm:$0xff]  }
 0x35f   : > { %v1803_v10 = vpop.permute.xlu1 %1802  ;;  %v1859_v29 = vld [vmem:[#allocation2 + $0x78] sm:$0xff] }
 0x360   : > { %1823 = vst.msk [vmem:[#allocation2 + $0xb8] sm:$0xff] %vm1291_vm4, %v1803_v10  ;;  %2036 = vmatprep.subr.bf16.mxu0 %v1877_v9  ;;  %v3627_v9 = vld [vmem:[%s4346_s9 + $0x18] sm:$0xff]   ;;  %v3628_v10 = vld [vmem:[%s4346_s9 + $0x20] sm:$0xff]  }
 0x361   : > { %2037 = vmatpush1.bf16.msra.mxu0 %v1876_v11  ;;  %v1801_v16 = vpop.permute.xlu0 %1800  ;;  %v1857_v25 = vld [vmem:[#allocation2 + $0x68] sm:$0xff] }
 0x362   : > { %1822 = vst.msk [vmem:[#allocation2 + $0xa8] sm:$0xff] %vm1291_vm4, %v1801_v16  ;;  %2038 = vmatprep.subr.bf16.mxu0 %v1879_v12  ;;  %v1883_v30 = vpack.c.bf16 %v1859_v29, %v1857_v25  ;;  %v3629_v11 = vld [vmem:[%s4346_s9 + $0x28] sm:$0xff]   ;;  %v3630_v12 = vld [vmem:[%s4346_s9 + $0x30] sm:$0xff]  }
 0x363   : > { %v1315_v17 = vpop.permute.xlu1 %1314  ;;  %v1855_v24 = vld [vmem:[#allocation2 + $0x58] sm:$0xff] }
 0x364   : > { %1335 = vst.msk [vmem:[#allocation2 + $0xb0] sm:$0xff] %vm1291_vm4, %v1315_v17 }
 0x365   : > { %2039 = vmatpush1.bf16.msra.mxu0 %v1878_v18  ;;  %v1313_v22 = vpop.permute.xlu0 %1312  ;;  %v1853_v23 = vld [vmem:[#allocation2 + $0x48] sm:$0xff] }
 0x366   : > { %1334 = vst.msk [vmem:[#allocation2 + $0xa0] sm:$0xff] %vm1291_vm4, %v1313_v22  ;;  %v1881_v26 = vpack.c.bf16 %v1855_v24, %v1853_v23 }
 0x367   : > { %v1319_v27 = vpop.permute.xlu1 %1318  ;;  %v1867_v47 = vld [vmem:[#allocation2 + $0xb8] sm:$0xff] }
 0x368   : > { %1337 = vst.msk [vmem:[#allocation2 + $0xd0] sm:$0xff] %vm1291_vm4, %v1319_v27  ;;  %2040 = vmatprep.subr.bf16.mxu0 %v1881_v26 }
 0x369   : > { %v1805_v34 = vpop.permute.xlu0 %1804  ;;  %2041 = vmatpush1.bf16.msra.mxu0 %v1880_v28  ;;  %v1865_v44 = vld [vmem:[#allocation2 + $0xa8] sm:$0xff] }
 0x36a   : > { %1824 = vst.msk [vmem:[#allocation2 + $0xc8] sm:$0xff] %vm1291_vm4, %v1805_v34  ;;  %2042 = vmatprep.subr.bf16.mxu0 %v1883_v30  ;;  %v1887_v48 = vpack.c.bf16 %v1867_v47, %v1865_v44 }
 0x36b   : > { %v1807_v36 = vpop.permute.xlu1 %1806  ;;  %v1866_v52 = vld [vmem:[#allocation2 + $0xb0] sm:$0xff] }
 0x36c   : > { %1825 = vst.msk [vmem:[#allocation2 + $0xd8] sm:$0xff] %vm1291_vm4, %v1807_v36 }
 0x36d   : > { %v1317_v43 = vpop.permute.xlu0 %1316  ;;  %2043 = vmatpush1.bf16.msra.mxu0 %v1882_v37  ;;  %v1864_v49 = vld [vmem:[#allocation2 + $0xa0] sm:$0xff] }
 0x36e   : > { %1336 = vst.msk [vmem:[#allocation2 + $0xc0] sm:$0xff] %vm1291_vm4, %v1317_v43  ;;  %2044 = vmatprep.subr.bf16.mxu0 %v1885_v39  ;;  %v1886_v54 = vpack.c.bf16 %v1866_v52, %v1864_v49 }
 0x36f   : > { %v1811_v45 = vpop.permute.xlu1 %1810  ;;  %v1870_v61 = vld [vmem:[#allocation2 + $0xd0] sm:$0xff] }
 0x370   : > { %1827 = vst.msk [vmem:[#allocation2 + $0xf8] sm:$0xff] %vm1291_vm4, %v1811_v45 }
 0x371   : > { %v1809_v51 = vpop.permute.xlu0 %1808  ;;  %2045 = vmatpush1.bf16.msra.mxu0 %v1884_v46  ;;  %v1869_v55 = vld [vmem:[#allocation2 + $0xc8] sm:$0xff] }
 0x372   : > { %1826 = vst.msk [vmem:[#allocation2 + $0xe8] sm:$0xff] %vm1291_vm4, %v1809_v51  ;;  %2046 = vmatprep.subr.bf16.mxu0 %v1887_v48 }
 0x373   : > { %v1323_v53 = vpop.permute.xlu1 %1322  ;;  %v1871_v56 = vld [vmem:[#allocation2 + $0xd8] sm:$0xff] }
 0x374   : > { %1339 = vst.msk [vmem:[#allocation2 + $0xf0] sm:$0xff] %vm1291_vm4, %v1323_v53  ;;  %v1889_v57 = vpack.c.bf16 %v1871_v56, %v1869_v55 }
 0x375   : > { %v1321_v59 = vpop.permute.xlu0 %1320  ;;  %2047 = vmatpush1.bf16.msra.mxu0 %v1886_v54  ;;  %v1868_v60 = vld [vmem:[#allocation2 + $0xc0] sm:$0xff] }
 0x376   : > { %1338 = vst.msk [vmem:[#allocation2 + $0xe0] sm:$0xff] %vm1291_vm4, %v1321_v59  ;;  %2048 = vmatprep.subr.bf16.mxu0 %v1889_v57  ;;  %v1888_v62 = vpack.c.bf16 %v1870_v61, %v1868_v60 }
 0x377   : > { %v1875_v0 = vld [vmem:[#allocation2 + $0xf8] sm:$0xff] }
 0x379   : > { %2049 = vmatpush1.bf16.msra.mxu0 %v1888_v62  ;;  %v1873_v63 = vld [vmem:[#allocation2 + $0xe8] sm:$0xff] }
 0x37a   : > { %v1891_v2 = vpack.c.bf16 %v1875_v0, %v1873_v63 }
 0x37b   : > { %v1874_v4 = vld [vmem:[#allocation2 + $0xf0] sm:$0xff] }
 0x37c   : > { %2050 = vmatprep.subr.bf16.mxu0 %v1891_v2 }
 0x37d   : > { %v1872_v3 = vld [vmem:[#allocation2 + $0xe0] sm:$0xff] }
 0x37e   : > { %v1890_v5 = vpack.c.bf16 %v1874_v4, %v1872_v3 }
 0x380   : > { %2051 = vmatpush1.bf16.msra.mxu0 %v1890_v5 }
 0x383   : > { %2069 = vmatmul.mubr.bf16.vlgmr.msra.gmra.mrb[44].mxu0 %v3624_v6 }
 0x384   : > { %2078 = vmatprep.mubr.bf16.mxu0 %v3720_v1  ;;  %v1916_v18 = vpop.permute.xlu1 %1915 }
 0x386   : > { %v1911_v14 = vpop.permute.xlu0 %1910 }
 0x388   : > { %v1926_v34 = vpop.permute.xlu1 %1925 }
 0x38a   : > { %v1921_v29 = vpop.permute.xlu0 %1920 }
 0x38b   : > { %2079 = vmatmul.mubr.bf16.gmra.mrb[48].mxu0 %v3625_v7 }
 0x38c   : > { %2088 = vmatprep.mubr.bf16.mxu0 %v3720_v1  ;;  %v1936_v50 = vpop.permute.xlu1 %1935 }
 0x38e   : > { %v1931_v45 = vpop.permute.xlu0 %1930 }
 0x390   : > { %v1946_v3 = vpop.permute.xlu1 %1945 }
 0x392   : > { %v1941_v61 = vpop.permute.xlu0 %1940 }
 0x393   : > { %2089 = vmatmul.mubr.bf16.gmra.mrb[52].mxu0 %v3626_v8 }
 0x394   : > { %2098 = vmatprep.mubr.bf16.mxu0 %v3720_v1 }
 0x39b   : > { %2099 = vmatmul.mubr.bf16.gmra.mrb[56].mxu0 %v3627_v9 }
 0x39c   : > { %2108 = vmatprep.mubr.bf16.mxu0 %v3720_v1 }
 0x3a3   : > { %2109 = vmatmul.mubr.bf16.gmra.mrb[60].mxu0 %v3628_v10 }
 0x3a4   : > { %2118 = vmatprep.mubr.bf16.mxu0 %v3720_v1 }
 0x3ab   : > { %2119 = vmatmul.mubr.bf16.gmra.mrb[64].mxu0 %v3629_v11 }
 0x3ac   : > { %2128 = vmatprep.mubr.bf16.mxu0 %v3720_v1 }
 0x3b3   : > { %2129 = vmatmul.mubr.bf16.gmra.mrb[68].mxu0 %v3630_v12 }
 0x3b4   : > { %2138 = vmatprep.mubr.bf16.mxu0 %v3720_v1 }
 0x3bb   : > { %2139 = vmatmul.mubr.bf16.gmra.mrb[72].mxu0 %v3631_v13 }
 0x3bc   : > { %2866 = vmatprep.mubr.bf16.mxu0 %v3720_v1 }
 0x456   : > { %v2070_v15 = vpop.f32.mrb[44].mxu0 }
 0x457   : > { %v2071_v16 = vadd.f32 %v2070_v15, %v1911_v14  ;;  %v2072_v17 = vpop.f32.mrb[45].mxu0 }
 0x458   : > { %v2073_v19 = vadd.f32 %v2072_v17, %v1911_v14  ;;  %v2074_v20 = vpop.f32.mrb[46].mxu0  ;;  %v1951_v14 = vpop.permute.xlu0 %1950 }
 0x459   : > { %v2075_v21 = vadd.f32 %v2074_v20, %v1916_v18  ;;  %v2076_v22 = vpop.f32.mrb[47].mxu0  ;;  %v2149_v24 = vmax.f32 %v2071_v16, 0.0 }
 0x45a   : > { %v2077_v23 = vadd.f32 %v2076_v22, %v1916_v18  ;;  %v2150_v26 = vmax.f32 %v2073_v19, 0.0  ;;  %v1956_v19 = vpop.permute.xlu1 %1955 }
 0x45b   : > { %v2151_v25 = vmax.f32 %v2075_v21, 0.0 }
 0x45c   : > { %v2152_v27 = vmax.f32 %v2077_v23, 0.0 }
 0x45d   : > { %v2229_v28 = vpack.c.bf16 %v2151_v25, %v2149_v24 }
 0x45e   : > { %v2230_v30 = vpack.c.bf16 %v2152_v27, %v2150_v26  ;;  %v2080_v31 = vpop.f32.mrb[48].mxu0 }
 0x45f   : > { %v2081_v32 = vadd.f32 %v2080_v31, %v1921_v29  ;;  %v2082_v33 = vpop.f32.mrb[49].mxu0 }
 0x460   : > { %v2083_v35 = vadd.f32 %v2082_v33, %v1921_v29  ;;  %v2084_v36 = vpop.f32.mrb[50].mxu0  ;;  %2293 = vmatprep.subr.bf16.mxu1 %v2230_v30  ;;  %v1961_v30 = vpop.permute.xlu0 %1960 }
 0x461   : > { %v2085_v37 = vadd.f32 %v2084_v36, %v1926_v34  ;;  %v2086_v38 = vpop.f32.mrb[51].mxu0  ;;  %2294 = vmatpush1.bf16.msra.mxu1 %v2229_v28  ;;  %v2153_v40 = vmax.f32 %v2081_v32, 0.0 }
 0x462   : > { %v2087_v39 = vadd.f32 %v2086_v38, %v1926_v34  ;;  %v2154_v42 = vmax.f32 %v2083_v35, 0.0  ;;  %v1966_v35 = vpop.permute.xlu1 %1965 }
 0x463   : > { %v2155_v41 = vmax.f32 %v2085_v37, 0.0 }
 0x464   : > { %v2156_v43 = vmax.f32 %v2087_v39, 0.0 }
 0x465   : > { %v2231_v44 = vpack.c.bf16 %v2155_v41, %v2153_v40 }
 0x466   : > { %v2232_v46 = vpack.c.bf16 %v2156_v43, %v2154_v42  ;;  %v2090_v47 = vpop.f32.mrb[52].mxu0 }
 0x467   : > { %v2091_v48 = vadd.f32 %v2090_v47, %v1931_v45  ;;  %v2092_v49 = vpop.f32.mrb[53].mxu0 }
 0x468   : > { %v2093_v51 = vadd.f32 %v2092_v49, %v1931_v45  ;;  %v2094_v52 = vpop.f32.mrb[54].mxu0  ;;  %2295 = vmatprep.subr.bf16.mxu1 %v2232_v46  ;;  %v1971_v46 = vpop.permute.xlu0 %1970 }
 0x469   : > { %v2095_v53 = vadd.f32 %v2094_v52, %v1936_v50  ;;  %v2096_v54 = vpop.f32.mrb[55].mxu0  ;;  %2296 = vmatpush1.bf16.msra.mxu1 %v2231_v44  ;;  %v2157_v56 = vmax.f32 %v2091_v48, 0.0 }
 0x46a   : > { %v2097_v55 = vadd.f32 %v2096_v54, %v1936_v50  ;;  %v2158_v58 = vmax.f32 %v2093_v51, 0.0  ;;  %v1976_v51 = vpop.permute.xlu1 %1975 }
 0x46b   : > { %v2159_v57 = vmax.f32 %v2095_v53, 0.0 }
 0x46c   : > { %v2160_v59 = vmax.f32 %v2097_v55, 0.0 }
 0x46d   : > { %v2233_v60 = vpack.c.bf16 %v2159_v57, %v2157_v56 }
 0x46e   : > { %v2234_v62 = vpack.c.bf16 %v2160_v59, %v2158_v58  ;;  %v2100_v63 = vpop.f32.mrb[56].mxu0 }
 0x46f   : > { %v2101_v0 = vadd.f32 %v2100_v63, %v1941_v61  ;;  %v2102_v2 = vpop.f32.mrb[57].mxu0 }
 0x470   : > { %v2103_v4 = vadd.f32 %v2102_v2, %v1941_v61  ;;  %v2104_v5 = vpop.f32.mrb[58].mxu0  ;;  %2297 = vmatprep.subr.bf16.mxu1 %v2234_v62  ;;  %v1981_v62 = vpop.permute.xlu0 %1980 }
 0x471   : > { %v2105_v6 = vadd.f32 %v2104_v5, %v1946_v3  ;;  %v2106_v7 = vpop.f32.mrb[59].mxu0  ;;  %2298 = vmatpush1.bf16.msra.mxu1 %v2233_v60  ;;  %v2161_v9 = vmax.f32 %v2101_v0, 0.0 }
 0x472   : > { %v2107_v8 = vadd.f32 %v2106_v7, %v1946_v3  ;;  %v2162_v11 = vmax.f32 %v2103_v4, 0.0  ;;  %v1986_v4 = vpop.permute.xlu1 %1985 }
 0x473   : > { %v2163_v10 = vmax.f32 %v2105_v6, 0.0 }
 0x474   : > { %v2164_v12 = vmax.f32 %v2107_v8, 0.0 }
 0x475   : > { %v2235_v13 = vpack.c.bf16 %v2163_v10, %v2161_v9 }
 0x476   : > { %v2236_v15 = vpack.c.bf16 %v2164_v12, %v2162_v11  ;;  %v2110_v16 = vpop.f32.mrb[60].mxu0 }
 0x477   : > { %v2111_v17 = vadd.f32 %v2110_v16, %v1951_v14  ;;  %v2112_v18 = vpop.f32.mrb[61].mxu0  ;;  %v3635_v16 = vld [vmem:[%s3861_s22 + $0x4] ss:$8 sps:$4 sm:$0xff]  }
 0x478   : > { %v2113_v20 = vadd.f32 %v2112_v18, %v1951_v14  ;;  %v2114_v21 = vpop.f32.mrb[62].mxu0  ;;  %2299 = vmatprep.subr.bf16.mxu1 %v2236_v15  ;;  %v3633_v18 = vld [vmem:[%s3861_s22] ss:$8 sps:$4 sm:$0xff]  }
 0x479   : > { %v2115_v22 = vadd.f32 %v2114_v21, %v1956_v19  ;;  %v2116_v23 = vpop.f32.mrb[63].mxu0  ;;  %2300 = vmatpush1.bf16.msra.mxu1 %v2235_v13  ;;  %v2165_v25 = vmax.f32 %v2111_v17, 0.0  ;;  %v3632_v17 = vld [vmem:[%s4349_s12] sm:$0xff]  }
 0x47a   : > { %v2117_v24 = vadd.f32 %v2116_v23, %v1956_v19  ;;  %v2166_v27 = vmax.f32 %v2113_v20, 0.0  ;;  %v3639_v19 = vld [vmem:[%s3861_s22 + $0x14] ss:$8 sps:$4 sm:$0xff]   ;;  %v3637_v20 = vld [vmem:[%s3861_s22 + $0x10] ss:$8 sps:$4 sm:$0xff]  }
 0x47b   : > { %v2167_v26 = vmax.f32 %v2115_v22, 0.0  ;;  %v3643_v21 = vld [vmem:[%s3861_s22 + $0x24] ss:$8 sps:$4 sm:$0xff]   ;;  %v3641_v23 = vld [vmem:[%s3861_s22 + $0x20] ss:$8 sps:$4 sm:$0xff]  }
 0x47c   : > { %v2168_v28 = vmax.f32 %v2117_v24, 0.0  ;;  %v3636_v22 = vld [vmem:[%s4349_s12 + $0x8] sm:$0xff]   ;;  %v3647_v24 = vld [vmem:[%s3861_s22 + $0x34] ss:$8 sps:$4 sm:$0xff]  }
 0x47d   : > { %v2237_v29 = vpack.c.bf16 %v2167_v26, %v2165_v25  ;;  %v3645_v25 = vld [vmem:[%s3861_s22 + $0x30] ss:$8 sps:$4 sm:$0xff]   ;;  %v3651_v26 = vld [vmem:[%s3861_s22 + $0x44] ss:$8 sps:$4 sm:$0xff]  }
 0x47e   : > { %v2238_v31 = vpack.c.bf16 %v2168_v28, %v2166_v27  ;;  %v2120_v32 = vpop.f32.mrb[64].mxu0  ;;  %v3640_v27 = vld [vmem:[%s4349_s12 + $0x10] sm:$0xff]   ;;  %v3649_v28 = vld [vmem:[%s3861_s22 + $0x40] ss:$8 sps:$4 sm:$0xff]  }
 0x47f   : > { %v2121_v33 = vadd.f32 %v2120_v32, %v1961_v30  ;;  %v2122_v34 = vpop.f32.mrb[65].mxu0  ;;  %v3644_v32 = vld [vmem:[%s4349_s12 + $0x18] sm:$0xff]  }
 0x480   : > { %v2123_v36 = vadd.f32 %v2122_v34, %v1961_v30  ;;  %v2124_v37 = vpop.f32.mrb[66].mxu0  ;;  %2301 = vmatprep.subr.bf16.mxu1 %v2238_v31  ;;  %v3653_v30 = vld [vmem:[%s3861_s22 + $0x50] ss:$8 sps:$4 sm:$0xff]   ;;  %v3659_v31 = vld [vmem:[%s3861_s22 + $0x64] ss:$8 sps:$4 sm:$0xff]  }
 0x481   : > { %v2125_v38 = vadd.f32 %v2124_v37, %v1966_v35  ;;  %v2126_v39 = vpop.f32.mrb[67].mxu0  ;;  %2302 = vmatpush1.bf16.msra.mxu1 %v2237_v29  ;;  %v2169_v41 = vmax.f32 %v2121_v33, 0.0  ;;  %v3655_v29 = vld [vmem:[%s3861_s22 + $0x54] ss:$8 sps:$4 sm:$0xff]   ;;  %v3657_v33 = vld [vmem:[%s3861_s22 + $0x60] ss:$8 sps:$4 sm:$0xff]  }
 0x482   : > { %v2127_v40 = vadd.f32 %v2126_v39, %v1966_v35  ;;  %v2170_v43 = vmax.f32 %v2123_v36, 0.0  ;;  %v3663_v34 = vld [vmem:[%s3861_s22 + $0x74] ss:$8 sps:$4 sm:$0xff]   ;;  %v3661_v35 = vld [vmem:[%s3861_s22 + $0x70] ss:$8 sps:$4 sm:$0xff]   ;;  %v3648_v36 = vld [vmem:[%s4349_s12 + $0x20] sm:$0xff]  }
 0x483   : > { %v2171_v42 = vmax.f32 %v2125_v38, 0.0  ;;  %v3652_v37 = vld [vmem:[%s4349_s12 + $0x28] sm:$0xff]   ;;  %v3656_v38 = vld [vmem:[%s4349_s12 + $0x30] sm:$0xff]   ;;  %v3660_v39 = vld [vmem:[%s4349_s12 + $0x38] sm:$0xff]  }
 0x484   : > { %v2172_v44 = vmax.f32 %v2127_v40, 0.0  ;;  %v3664_v40 = vld [vmem:[%s4348_s11] sm:$0xff]  }
 0x485   : > { %v2239_v45 = vpack.c.bf16 %v2171_v42, %v2169_v41  ;;  %v3665_v41 = vld [vmem:[%s4348_s11 + $0x8] sm:$0xff]   ;;  %v3666_v42 = vld [vmem:[%s4348_s11 + $0x10] sm:$0xff]  }
 0x486   : > { %v2240_v47 = vpack.c.bf16 %v2172_v44, %v2170_v43  ;;  %v2130_v48 = vpop.f32.mrb[68].mxu0  ;;  %v3667_v43 = vld [vmem:[%s4348_s11 + $0x18] sm:$0xff]   ;;  %v3668_v44 = vld [vmem:[%s4348_s11 + $0x20] sm:$0xff]  }
 0x487   : > { %v2131_v49 = vadd.f32 %v2130_v48, %v1971_v46  ;;  %v2132_v50 = vpop.f32.mrb[69].mxu0  ;;  %v2666_v48 = vpop.permute.xlu0 %2665 }
 0x488   : > { %v2133_v52 = vadd.f32 %v2132_v50, %v1971_v46  ;;  %v2134_v53 = vpop.f32.mrb[70].mxu0  ;;  %2303 = vmatprep.subr.bf16.mxu1 %v2240_v47  ;;  %v3670_v46 = vld [vmem:[%s4348_s11 + $0x30] sm:$0xff]   ;;  %v3671_v47 = vld [vmem:[%s4348_s11 + $0x38] sm:$0xff]  }
 0x489   : > { %v2135_v54 = vadd.f32 %v2134_v53, %v1976_v51  ;;  %v2136_v55 = vpop.f32.mrb[71].mxu0  ;;  %2304 = vmatpush1.bf16.msra.mxu1 %v2239_v45  ;;  %v2173_v57 = vmax.f32 %v2131_v49, 0.0  ;;  %v3669_v45 = vld [vmem:[%s4348_s11 + $0x28] sm:$0xff]  }
 0x48a   : > { %v2137_v56 = vadd.f32 %v2136_v55, %v1976_v51  ;;  %v2174_v59 = vmax.f32 %v2133_v52, 0.0  ;;  %v2671_v52 = vpop.permute.xlu1 %2670 }
 0x48b   : > { %v2175_v58 = vmax.f32 %v2135_v54, 0.0 }
 0x48c   : > { %v2176_v60 = vmax.f32 %v2137_v56, 0.0 }
 0x48d   : > { %v2241_v61 = vpack.c.bf16 %v2175_v58, %v2173_v57 }
 0x48e   : > { %v2242_v63 = vpack.c.bf16 %v2176_v60, %v2174_v59  ;;  %v2140_v0 = vpop.f32.mrb[72].mxu0 }
 0x48f   : > { %v2141_v2 = vadd.f32 %v2140_v0, %v1981_v62  ;;  %v2142_v3 = vpop.f32.mrb[73].mxu0 }
 0x490   : > { %v2143_v5 = vadd.f32 %v2142_v3, %v1981_v62  ;;  %v2144_v6 = vpop.f32.mrb[74].mxu0  ;;  %2305 = vmatprep.subr.bf16.mxu1 %v2242_v63  ;;  %v2676_v62 = vpop.permute.xlu0 %2675 }
 0x491   : > { %v2145_v7 = vadd.f32 %v2144_v6, %v1986_v4  ;;  %v2146_v8 = vpop.f32.mrb[75].mxu0  ;;  %2306 = vmatpush1.bf16.msra.mxu1 %v2241_v61  ;;  %v2177_v10 = vmax.f32 %v2141_v2, 0.0 }
 0x492   : > { %v2147_v9 = vadd.f32 %v2146_v8, %v1986_v4  ;;  %v2178_v12 = vmax.f32 %v2143_v5, 0.0  ;;  %v2681_v4 = vpop.permute.xlu1 %2680 }
 0x493   : > { %v2179_v11 = vmax.f32 %v2145_v7, 0.0 }
 0x494   : > { %v2180_v13 = vmax.f32 %v2147_v9, 0.0 }
 0x495   : > { %v2243_v14 = vpack.c.bf16 %v2179_v11, %v2177_v10 }
 0x496   : > { %v2244_v15 = vpack.c.bf16 %v2180_v13, %v2178_v12 }
 0x498   : > { %2307 = vmatprep.subr.bf16.mxu1 %v2244_v15  ;;  %v2686_v15 = vpop.permute.xlu0 %2685 }
 0x499   : > { %2308 = vmatpush1.bf16.msra.mxu1 %v2243_v14 }
 0x49a   : > { %2534 = vmatprep.subr.bf16.mxu1 %v3635_v16 }
 0x49c   : > { %2326 = vmatmul.mubr.bf16.vlgmr.msra.gmra.mrb[28].mxu1 %v3632_v17 }
 0x49d   : > { %2535 = vmatpush1.bf16.msra.mxu1 %v3633_v18  ;;  %2335 = vmatprep.mubr.bf16.mxu1 %v3720_v1 }
 0x49e   : > { %2536 = vmatprep.subr.bf16.mxu1 %v3639_v19 }
 0x4a1   : > { %2537 = vmatpush1.bf16.msra.mxu1 %v3637_v20  ;;  %v2691_v20 = vpop.permute.xlu1 %2690 }
 0x4a2   : > { %2538 = vmatprep.subr.bf16.mxu1 %v3643_v21 }
 0x4a4   : > { %2336 = vmatmul.mubr.bf16.gmra.mrb[32].mxu1 %v3636_v22 }
 0x4a5   : > { %2345 = vmatprep.mubr.bf16.mxu1 %v3720_v1  ;;  %2539 = vmatpush1.bf16.msra.mxu1 %v3641_v23 }
 0x4a6   : > { %2540 = vmatprep.subr.bf16.mxu1 %v3647_v24 }
 0x4a9   : > { %2541 = vmatpush1.bf16.msra.mxu1 %v3645_v25 }
 0x4aa   : > { %2542 = vmatprep.subr.bf16.mxu1 %v3651_v26 }
 0x4ac   : > { %2346 = vmatmul.mubr.bf16.gmra.mrb[36].mxu1 %v3640_v27 }
 0x4ad   : > { %2355 = vmatprep.mubr.bf16.mxu1 %v3720_v1  ;;  %2543 = vmatpush1.bf16.msra.mxu1 %v3649_v28 }
 0x4ae   : > { %2544 = vmatprep.subr.bf16.mxu1 %v3655_v29 }
 0x4b1   : > { %2545 = vmatpush1.bf16.msra.mxu1 %v3653_v30 }
 0x4b2   : > { %2546 = vmatprep.subr.bf16.mxu1 %v3659_v31  ;;  %v2696_v31 = vpop.permute.xlu0 %2695 }
 0x4b4   : > { %2356 = vmatmul.mubr.bf16.gmra.mrb[40].mxu1 %v3644_v32 }
 0x4b5   : > { %2365 = vmatprep.mubr.bf16.mxu1 %v3720_v1  ;;  %2547 = vmatpush1.bf16.msra.mxu1 %v3657_v33 }
 0x4b6   : > { %2548 = vmatprep.subr.bf16.mxu1 %v3663_v34 }
 0x4b9   : > { %2549 = vmatpush1.bf16.msra.mxu1 %v3661_v35 }
 0x4bc   : > { %2366 = vmatmul.mubr.bf16.gmra.mrb[44].mxu1 %v3648_v36  ;;  %v2701_v36 = vpop.permute.xlu1 %2700 }
 0x4bd   : > { %2375 = vmatprep.mubr.bf16.mxu1 %v3720_v1 }
 0x4c4   : > { %2376 = vmatmul.mubr.bf16.gmra.mrb[48].mxu1 %v3652_v37 }
 0x4c5   : > { %2385 = vmatprep.mubr.bf16.mxu1 %v3720_v1 }
 0x4cc   : > { %2386 = vmatmul.mubr.bf16.gmra.mrb[52].mxu1 %v3656_v38 }
 0x4cd   : > { %2395 = vmatprep.mubr.bf16.mxu1 %v3720_v1 }
 0x4d4   : > { %2396 = vmatmul.mubr.bf16.gmra.mrb[56].mxu1 %v3660_v39 }
 0x4d5   : > { %2566 = vmatprep.mubr.bf16.mxu1 %v3720_v1 }
 0x4dc   : > { %2567 = vmatmul.mubr.bf16.vlgmr.msra.gmra.mrb[28].mxu1 %v3664_v40 }
 0x4dd   : > { %2576 = vmatprep.mubr.bf16.mxu1 %v3720_v1 }
 0x4e4   : > { %2577 = vmatmul.mubr.bf16.gmra.mrb[32].mxu1 %v3665_v41 }
 0x4e5   : > { %2586 = vmatprep.mubr.bf16.mxu1 %v3720_v1 }
 0x4ec   : > { %2587 = vmatmul.mubr.bf16.gmra.mrb[36].mxu1 %v3666_v42 }
 0x4ed   : > { %2596 = vmatprep.mubr.bf16.mxu1 %v3720_v1 }
 0x4f4   : > { %2597 = vmatmul.mubr.bf16.gmra.mrb[40].mxu1 %v3667_v43 }
 0x4f5   : > { %2606 = vmatprep.mubr.bf16.mxu1 %v3720_v1 }
 0x4fc   : > { %2607 = vmatmul.mubr.bf16.gmra.mrb[44].mxu1 %v3668_v44 }
 0x4fd   : > { %2616 = vmatprep.mubr.bf16.mxu1 %v3720_v1 }
 0x504   : > { %2617 = vmatmul.mubr.bf16.gmra.mrb[48].mxu1 %v3669_v45 }
 0x505   : > { %2626 = vmatprep.mubr.bf16.mxu1 %v3720_v1 }
 0x50c   : > { %2627 = vmatmul.mubr.bf16.gmra.mrb[52].mxu1 %v3670_v46 }
 0x50d   : > { %2636 = vmatprep.mubr.bf16.mxu1 %v3720_v1 }
 0x514   : > { %2637 = vmatmul.mubr.bf16.gmra.mrb[56].mxu1 %v3671_v47  ;;  %v2706_v47 = vpop.permute.xlu0 %2705 }
 0x5af   : > { %v2568_v49 = vpop.f32.mrb[28].mxu1 }
 0x5b0   : > { %v2743_v50 = vadd.f32 %v2666_v48, %v2568_v49  ;;  %v2570_v51 = vpop.f32.mrb[29].mxu1 }
 0x5b1   : > { %v2744_v53 = vadd.f32 %v2666_v48, %v2570_v51  ;;  %v2572_v54 = vpop.f32.mrb[30].mxu1 }
 0x5b2   : > { %v2745_v55 = vadd.f32 %v2671_v52, %v2572_v54  ;;  %v2574_v56 = vpop.f32.mrb[31].mxu1  ;;  %v2775_v58 = vmax.f32 %v2743_v50, 0.0 }
 0x5b3   : > { %v2746_v57 = vadd.f32 %v2671_v52, %v2574_v56  ;;  %v2776_v60 = vmax.f32 %v2744_v53, 0.0  ;;  %v2711_v52 = vpop.permute.xlu1 %2710 }
 0x5b4   : > { %v2777_v59 = vmax.f32 %v2745_v55, 0.0 }
 0x5b5   : > { %v2778_v61 = vmax.f32 %v2746_v57, 0.0 }
 0x5b6   : > { %v2808_v1 = vpack.c.bf16 %v2777_v59, %v2775_v58 }
 0x5b7   : > { %v2809_v63 = vpack.c.bf16 %v2778_v61, %v2776_v60  ;;  %v2578_v0 = vpop.f32.mrb[32].mxu1 }
 0x5b8   : > { %v2747_v2 = vadd.f32 %v2676_v62, %v2578_v0  ;;  %v2580_v3 = vpop.f32.mrb[33].mxu1 }
 0x5b9   : > { %v2748_v5 = vadd.f32 %v2676_v62, %v2580_v3  ;;  %v2582_v6 = vpop.f32.mrb[34].mxu1  ;;  %2834 = vmatprep.subr.bf16.mxu0 %v2809_v63  ;;  %v2716_v62 = vpop.permute.xlu0 %2715 }
 0x5ba   : > { %v2749_v7 = vadd.f32 %v2681_v4, %v2582_v6  ;;  %v2584_v8 = vpop.f32.mrb[35].mxu1  ;;  %2835 = vmatpush1.bf16.msra.mxu0 %v2808_v1  ;;  %v2779_v10 = vmax.f32 %v2747_v2, 0.0 }
 0x5bb   : > { %v2750_v9 = vadd.f32 %v2681_v4, %v2584_v8  ;;  %v2780_v12 = vmax.f32 %v2748_v5, 0.0  ;;  %v2721_v4 = vpop.permute.xlu1 %2720 }
 0x5bc   : > { %v2781_v11 = vmax.f32 %v2749_v7, 0.0 }
 0x5bd   : > { %v2782_v13 = vmax.f32 %v2750_v9, 0.0 }
 0x5be   : > { %v2810_v14 = vpack.c.bf16 %v2781_v11, %v2779_v10 }
 0x5bf   : > { %v2811_v16 = vpack.c.bf16 %v2782_v13, %v2780_v12  ;;  %v2588_v17 = vpop.f32.mrb[36].mxu1 }
 0x5c0   : > { %v2751_v18 = vadd.f32 %v2686_v15, %v2588_v17  ;;  %v2590_v19 = vpop.f32.mrb[37].mxu1 }
 0x5c1   : > { %v2752_v21 = vadd.f32 %v2686_v15, %v2590_v19  ;;  %v2592_v22 = vpop.f32.mrb[38].mxu1  ;;  %2836 = vmatprep.subr.bf16.mxu0 %v2811_v16  ;;  %v2726_v15 = vpop.permute.xlu0 %2725 }
 0x5c2   : > { %v2753_v23 = vadd.f32 %v2691_v20, %v2592_v22  ;;  %v2594_v24 = vpop.f32.mrb[39].mxu1  ;;  %2837 = vmatpush1.bf16.msra.mxu0 %v2810_v14  ;;  %v2783_v26 = vmax.f32 %v2751_v18, 0.0 }
 0x5c3   : > { %v2754_v25 = vadd.f32 %v2691_v20, %v2594_v24  ;;  %v2784_v28 = vmax.f32 %v2752_v21, 0.0  ;;  %v2731_v20 = vpop.permute.xlu1 %2730 }
 0x5c4   : > { %v2785_v27 = vmax.f32 %v2753_v23, 0.0 }
 0x5c5   : > { %v2786_v29 = vmax.f32 %v2754_v25, 0.0 }
 0x5c6   : > { %v2812_v30 = vpack.c.bf16 %v2785_v27, %v2783_v26 }
 0x5c7   : > { %v2813_v32 = vpack.c.bf16 %v2786_v29, %v2784_v28  ;;  %v2598_v33 = vpop.f32.mrb[40].mxu1 }
 0x5c8   : > { %v2755_v34 = vadd.f32 %v2696_v31, %v2598_v33  ;;  %v2600_v35 = vpop.f32.mrb[41].mxu1 }
 0x5c9   : > { %v2756_v37 = vadd.f32 %v2696_v31, %v2600_v35  ;;  %v2602_v38 = vpop.f32.mrb[42].mxu1  ;;  %2838 = vmatprep.subr.bf16.mxu0 %v2813_v32  ;;  %v2736_v31 = vpop.permute.xlu0 %2735 }
 0x5ca   : > { %v2757_v39 = vadd.f32 %v2701_v36, %v2602_v38  ;;  %v2604_v40 = vpop.f32.mrb[43].mxu1  ;;  %2839 = vmatpush1.bf16.msra.mxu0 %v2812_v30  ;;  %v2787_v42 = vmax.f32 %v2755_v34, 0.0 }
 0x5cb   : > { %v2758_v41 = vadd.f32 %v2701_v36, %v2604_v40  ;;  %v2788_v44 = vmax.f32 %v2756_v37, 0.0  ;;  %v2741_v36 = vpop.permute.xlu1 %2740 }
 0x5cc   : > { %v2789_v43 = vmax.f32 %v2757_v39, 0.0 }
 0x5cd   : > { %v2790_v45 = vmax.f32 %v2758_v41, 0.0 }
 0x5ce   : > { %v2814_v46 = vpack.c.bf16 %v2789_v43, %v2787_v42 }
 0x5cf   : > { %v2815_v48 = vpack.c.bf16 %v2790_v45, %v2788_v44  ;;  %v2608_v49 = vpop.f32.mrb[44].mxu1  ;;  %v2889_v44 = vld [vmem:[%s706_s0 + $0x8] sm:$0xff]  ;;  %v2891_v45 = vld [vmem:[%s706_s0 + $0x18] sm:$0xff] }
 0x5d0   : > { %v2759_v50 = vadd.f32 %v2706_v47, %v2608_v49  ;;  %v2610_v51 = vpop.f32.mrb[45].mxu1 }
 0x5d1   : > { %v2760_v53 = vadd.f32 %v2706_v47, %v2610_v51  ;;  %v2612_v54 = vpop.f32.mrb[46].mxu1  ;;  %2840 = vmatprep.subr.bf16.mxu0 %v2815_v48  ;;  %v2888_v51 = vld [vmem:[%s706_s0] sm:$0xff] }
 0x5d2   : > { %v2761_v55 = vadd.f32 %v2711_v52, %v2612_v54  ;;  %v2614_v56 = vpop.f32.mrb[47].mxu1  ;;  %2841 = vmatpush1.bf16.msra.mxu0 %v2814_v46  ;;  %v2791_v58 = vmax.f32 %v2759_v50, 0.0  ;;  %v3557_v50 = vpack.c.bf16 %v2891_v45, %v2889_v44  ;;  %v2895_v54 = vld [vmem:[%s706_s0 + $0x38] sm:$0xff] }
 0x5d3   : > { %v2762_v57 = vadd.f32 %v2711_v52, %v2614_v56  ;;  %v2792_v60 = vmax.f32 %v2760_v53, 0.0  ;;  %v2890_v52 = vld [vmem:[%s706_s0 + $0x10] sm:$0xff]  ;;  %v2893_v53 = vld [vmem:[%s706_s0 + $0x28] sm:$0xff] }
 0x5d4   : > { %v2793_v59 = vmax.f32 %v2761_v55, 0.0  ;;  %v2807_v55 = vld [vmem:[%s4351_s14] sm:$0x1]  ;;  %v3559_v56 = vpack.c.bf16 %v2890_v52, %v2888_v51 }
 0x5d5   : > { %v2794_v61 = vmax.f32 %v2762_v57, 0.0  ;;  %v3561_v57 = vpack.c.bf16 %v2895_v54, %v2893_v53 }
 0x5d6   : > { %v2816_v1 = vpack.c.bf16 %v2793_v59, %v2791_v58  ;;  %v2892_v58 = vld [vmem:[%s706_s0 + $0x20] sm:$0xff]  ;;  %v2894_v59 = vld [vmem:[%s706_s0 + $0x30] sm:$0xff] }
 0x5d7   : > { %v2817_v63 = vpack.c.bf16 %v2794_v61, %v2792_v60  ;;  %v2618_v0 = vpop.f32.mrb[48].mxu1  ;;  %v3563_v60 = vpack.c.bf16 %v2894_v59, %v2892_v58  ;;  %v3722_v61 = vmov 0.0  }
 0x5d8   : > { %v2763_v2 = vadd.f32 %v2716_v62, %v2618_v0  ;;  %v2620_v3 = vpop.f32.mrb[49].mxu1 }
 0x5d9   : > { %v2764_v5 = vadd.f32 %v2716_v62, %v2620_v3  ;;  %v2622_v6 = vpop.f32.mrb[50].mxu1  ;;  %2842 = vmatprep.subr.bf16.mxu0 %v2817_v63  ;;  %v2830_v62 = vlaneseq }
 0x5da   : > { %v2765_v7 = vadd.f32 %v2721_v4, %v2622_v6  ;;  %v2624_v8 = vpop.f32.mrb[51].mxu1  ;;  %2843 = vmatpush1.bf16.msra.mxu0 %v2816_v1  ;;  %v2795_v10 = vmax.f32 %v2763_v2, 0.0  ;;  %v2887_v1 = vld [vmem:[%s4353_s16] sm:$0xf]  ;;  %v2828_v2 = vpop.permute.xlu1 %2827 }
 0x5db   : > { %v2766_v9 = vadd.f32 %v2721_v4, %v2624_v8  ;;  %v2796_v12 = vmax.f32 %v2764_v5, 0.0  ;;  %v2831_v63 = vshrl.u32 %v2830_v62, 7 }
 0x5dc   : > { %v2797_v11 = vmax.f32 %v2765_v7, 0.0 }
 0x5dd   : > { %v2798_v13 = vmax.f32 %v2766_v9, 0.0  ;;  %v2832_v0 = vsub.s32 0, %v2831_v63 }
 0x5de   : > { %v2818_v14 = vpack.c.bf16 %v2797_v11, %v2795_v10  ;;  %v2994_v53 = vpop.permute.xlu1 %2993 }
 0x5df   : > { %v2819_v16 = vpack.c.bf16 %v2798_v13, %v2796_v12  ;;  %v2628_v17 = vpop.f32.mrb[52].mxu1  ;;  %v2833_v3 = vrot.slane %v2828_v2, %v2832_v0  ;;  %v2900_v12 = vpop.permute.xlu0 %2899 }
 0x5e0   : > { %v2767_v18 = vadd.f32 %v2726_v15, %v2628_v17  ;;  %v2630_v19 = vpop.f32.mrb[53].mxu1 }
 0x5e1   : > { %v2768_v21 = vadd.f32 %v2726_v15, %v2630_v19  ;;  %v2632_v22 = vpop.f32.mrb[54].mxu1  ;;  %2844 = vmatprep.subr.bf16.mxu0 %v2819_v16  ;;  %v2978_v19 = vld [vmem:[%s4355_s18] sm:$0xff] }
 0x5e2   : > { %v2769_v23 = vadd.f32 %v2731_v20, %v2632_v22  ;;  %v2634_v24 = vpop.f32.mrb[55].mxu1  ;;  %2845 = vmatpush1.bf16.msra.mxu0 %v2818_v14  ;;  %v2799_v26 = vmax.f32 %v2767_v18, 0.0 }
 0x5e3   : > { %v2770_v25 = vadd.f32 %v2731_v20, %v2634_v24  ;;  %v2800_v28 = vmax.f32 %v2768_v21, 0.0  ;;  %v2979_v24 = vld [vmem:[%s4355_s18 + $0x8] sm:$0xff] }
 0x5e4   : > { %v2801_v27 = vmax.f32 %v2769_v23, 0.0 }
 0x5e5   : > { %v2802_v29 = vmax.f32 %v2770_v25, 0.0  ;;  %v2980_v25 = vld [vmem:[%s4355_s18 + $0x10] sm:$0xff] }
 0x5e6   : > { %v2820_v30 = vpack.c.bf16 %v2801_v27, %v2799_v26  ;;  %v2981_v26 = vld [vmem:[%s4355_s18 + $0x18] sm:$0xff]  ;;  %v3162_v27 = vld [vmem:[%s696_s1] sm:$0xff] }
 0x5e7   : > { %v2821_v32 = vpack.c.bf16 %v2802_v29, %v2800_v28  ;;  %v2638_v33 = vpop.f32.mrb[56].mxu1  ;;  %v3164_v28 = vld [vmem:[%s696_s1 + $0x10] sm:$0xff] }
 0x5e8   : > { %v2771_v34 = vadd.f32 %v2736_v31, %v2638_v33  ;;  %v2640_v35 = vpop.f32.mrb[57].mxu1 }
 0x5e9   : > { %v2772_v37 = vadd.f32 %v2736_v31, %v2640_v35  ;;  %v2642_v38 = vpop.f32.mrb[58].mxu1  ;;  %2846 = vmatprep.subr.bf16.mxu0 %v2821_v32  ;;  %v3166_v31 = vld [vmem:[%s696_s1 + $0x20] sm:$0xff]  ;;  %v3168_v32 = vld [vmem:[%s696_s1 + $0x30] sm:$0xff]  ;;  %v3165_v35 = vld [vmem:[%s696_s1 + $0x18] sm:$0xff] }
 0x5ea   : > { %v2773_v39 = vadd.f32 %v2741_v36, %v2642_v38  ;;  %v2644_v40 = vpop.f32.mrb[59].mxu1  ;;  %2847 = vmatpush1.bf16.msra.mxu0 %v2820_v30  ;;  %v2803_v42 = vmax.f32 %v2771_v34, 0.0  ;;  %v3163_v30 = vld [vmem:[%s696_s1 + $0x8] sm:$0xff] }
 0x5eb   : > { %v2774_v41 = vadd.f32 %v2741_v36, %v2644_v40  ;;  %v2804_v46 = vmax.f32 %v2772_v37, 0.0  ;;  %v3167_v36 = vld [vmem:[%s696_s1 + $0x28] sm:$0xff]  ;;  %v3169_v37 = vld [vmem:[%s696_s1 + $0x38] sm:$0xff] }
 0x5ec   : > { %v2805_v43 = vmax.f32 %v2773_v39, 0.0 }
 0x5ed   : > { %v2806_v47 = vmax.f32 %v2774_v41, 0.0 }
 0x5ee   : > { %v2822_v48 = vpack.c.bf16 %v2805_v43, %v2803_v42 }
 0x5ef   : > { %v2823_v49 = vpack.c.bf16 %v2806_v47, %v2804_v46  ;;  %v2989_v47 = vpop.permute.xlu0 %2988 }
 0x5f1   : > { %2848 = vmatprep.subr.bf16.mxu0 %v2823_v49 }
 0x5f2   : > { %2849 = vmatpush1.bf16.msra.mxu0 %v2822_v48 }
 0x5f3   : > { %3558 = vmatprep.subr.bf16.mxu0 %v3557_v50 }
 0x5f5   : > { %2867 = vmatmul.mubr.bf16.vlgmr.msra.gmra.mrb[76].mxu0 %v2807_v55 }
 0x5f6   : > { %3560 = vmatpush1.bf16.msra.mxu0 %v3559_v56  ;;  %2969 = vmatprep.mubr.f32.mxu0 %v3722_v61 }
 0x5f7   : > { %3562 = vmatprep.subr.bf16.mxu0 %v3561_v57 }
 0x5fa   : > { %3564 = vmatpush1.bf16.msra.mxu0 %v3563_v60  ;;  %v2999_v60 = vpop.permute.xlu0 %2998 }
 0x5fd   : > { %3414 = vmatmul.mubr.msk.f32.vlgmr.msra.gmra.mrb[80].mxu0 %vm744_vm0, %v2887_v1 }
 0x5fe   : > { %3089 = vmatprep.mubr.f32.mxu0 %v3722_v61 }
 0x6c8   : > { %v2868_v4 = vpop.f32.mrb[76].mxu0 }
 0x6c9   : > { %v2869_v5 = vadd.f32 %v2868_v4, %v2833_v3  ;;  %v2870_v6 = vpop.f32.mrb[77].mxu0 }
 0x6ca   : > { %v2871_v7 = vadd.f32 %v2870_v6, %v2833_v3  ;;  %v2872_v8 = vpop.f32.mrb[78].mxu0  ;;  %v3004_v3 = vpop.permute.xlu1 %3003 }
 0x6cb   : > { %v3412_v9 = vmul.f32 -1.442695, %v2869_v5  ;;  %v2873_v10 = vpop.f32.mrb[79].mxu0 }
 0x6cc   : > { %v3413_v11 = vmul.f32 -1.442695, %v2871_v7 }
 0x6cd   : > { %3672 = vpow2.f32 %v3412_v9 }
 0x6ce   : > { %3674 = vpow2.f32 %v3413_v11 }
 0x6d0   : > { %v2971_v13 = vpop.f32.mrb[80].mxu0 }
 0x6d1   : > { %v2972_v14 = vadd.f32 %v2971_v13, %v2900_v12  ;;  %v2973_v15 = vpop.f32.mrb[81].mxu0 }
 0x6d2   : > { %v2974_v16 = vadd.f32 %v2973_v15, %v2900_v12 }
 0x6d3   : > { %v2976_v18 = vmax.f32 %v2972_v14, 0.0 }
 0x6d4   : > { %v2977_v17 = vmax.f32 %v2974_v16, 0.0 }
 0x6d6   : > { %3415 = vmatprep.subr.msk.mxu0 %vm3018_vm5, %v2977_v17 }
 0x6d7   : > { %v3673_v20 = vpop.eup %3672  ;;  %3416 = vmatpush1.msk.msra.mxu0 %vm3018_vm5, %v2976_v18 }
 0x6d8   : > { %v3675_v21 = vpop.eup %3674  ;;  %v2881_v22 = vadd.f32 1.0, %v3673_v20  ;;  %3417 = vmatmul.mubr.msk.f32.vlgmr.msra.gmra.mrb[82].mxu0 %vm864_vm2, %v2978_v19 }
 0x6d9   : > { %v2882_v23 = vadd.f32 1.0, %v3675_v21  ;;  %3095 = vmatprep.mubr.f32.mxu0 %v3722_v61 }
 0x6da   : > { %3676 = vrcp.f32 %v2881_v22 }
 0x6db   : > { %3678 = vrcp.f32 %v2882_v23 }
 0x6dc   : > { %3418 = vmatmul.mubr.msk.f32.gmra.mrb[84].mxu0 %vm864_vm2, %v2979_v24 }
 0x6dd   : > { %3101 = vmatprep.mubr.f32.mxu0 %v3722_v61 }
 0x6e0   : > { %3419 = vmatmul.mubr.msk.f32.gmra.mrb[86].mxu0 %vm864_vm2, %v2980_v25 }
 0x6e1   : > { %3107 = vmatprep.mubr.f32.mxu0 %v3722_v61 }
 0x6e4   : > { %v3677_v29 = vpop.eup %3676  ;;  %3420 = vmatmul.mubr.msk.f32.gmra.mrb[88].mxu0 %vm864_vm2, %v2981_v26 }
 0x6e5   : > { %v3679_v33 = vpop.eup %3678  ;;  %v3173_v34 = vrot.slane %v3677_v29, %v2832_v0 }
 0x6e6   : > { %v3177_v38 = vrot.slane %v3679_v33, %v2832_v0 }
 0x6e7   : > { %v4302_v39 = vmul.f32 %v3173_v34, %v3162_v27  ;;  %v4304_v40 = vmul.f32 %v3173_v34, %v3164_v28  ;;  %v4306_v41 = vmul.f32 %v3173_v34, %v3166_v31  ;;  %v4308_v42 = vmul.f32 %v3173_v34, %v3168_v32  ;;  %v3194_v34 = vld [vmem:[%s701_s25] sm:$0xff] }
 0x6e8   : > { %v4310_v43 = vmul.f32 %v3177_v38, %v3163_v30  ;;  %v4312_v44 = vmul.f32 %v3177_v38, %v3165_v35  ;;  %v4314_v45 = vmul.f32 %v3177_v38, %v3167_v36  ;;  %v4316_v46 = vmul.f32 %v3177_v38, %v3169_v37  ;;  %v3195_v38 = vld [vmem:[%s701_s25 + $0x8] sm:$0xff] }
 0x7ab   : > { %v3091_v48 = vpop.f32.mrb[82].mxu0 }
 0x7ac   : > { %v3092_v49 = vadd.f32 %v3091_v48, %v2989_v47  ;;  %v3093_v50 = vpop.f32.mrb[83].mxu0 }
 0x7ad   : > { %v3094_v51 = vadd.f32 %v3093_v50, %v2989_v47  ;;  %v3197_v47 = vld [vmem:[%s701_s25 + $0x18] sm:$0xff] }
 0x7ae   : > { %v3421_v52 = vmul.f32 -1.442695, %v3092_v49 }
 0x7af   : > { %v3422_v54 = vmul.f32 -1.442695, %v3094_v51  ;;  %v3097_v55 = vpop.f32.mrb[84].mxu0 }
 0x7b0   : > { %3680 = vpow2.f32 %v3421_v52  ;;  %v3098_v56 = vadd.f32 %v3097_v55, %v2994_v53  ;;  %v3099_v57 = vpop.f32.mrb[85].mxu0 }
 0x7b1   : > { %3682 = vpow2.f32 %v3422_v54  ;;  %v3100_v58 = vadd.f32 %v3099_v57, %v2994_v53 }
 0x7b2   : > { %v3423_v59 = vmul.f32 -1.442695, %v3098_v56 }
 0x7b3   : > { %v3424_v61 = vmul.f32 -1.442695, %v3100_v58  ;;  %v3103_v1 = vpop.f32.mrb[86].mxu0 }
 0x7b4   : > { %3684 = vpow2.f32 %v3423_v59  ;;  %v3104_v62 = vadd.f32 %v3103_v1, %v2999_v60  ;;  %v3105_v63 = vpop.f32.mrb[87].mxu0 }
 0x7b5   : > { %3686 = vpow2.f32 %v3424_v61  ;;  %v3106_v0 = vadd.f32 %v3105_v63, %v2999_v60 }
 0x7b6   : > { %v3425_v2 = vmul.f32 -1.442695, %v3104_v62 }
 0x7b7   : > { %v3426_v4 = vmul.f32 -1.442695, %v3106_v0  ;;  %v3109_v5 = vpop.f32.mrb[88].mxu0 }
 0x7b8   : > { %3688 = vpow2.f32 %v3425_v2  ;;  %v3110_v6 = vadd.f32 %v3109_v5, %v3004_v3  ;;  %v3111_v7 = vpop.f32.mrb[89].mxu0 }
 0x7b9   : > { %3690 = vpow2.f32 %v3426_v4  ;;  %v3112_v8 = vadd.f32 %v3111_v7, %v3004_v3 }
 0x7ba   : > { %v3681_v9 = vpop.eup %3680  ;;  %v3427_v10 = vmul.f32 -1.442695, %v3110_v6 }
 0x7bb   : > { %v3683_v11 = vpop.eup %3682  ;;  %v3138_v12 = vadd.f32 1.0, %v3681_v9  ;;  %v3428_v13 = vmul.f32 -1.442695, %v3112_v8 }
 0x7bc   : > { %v3139_v14 = vadd.f32 1.0, %v3683_v11  ;;  %3692 = vpow2.f32 %v3427_v10 }
 0x7bd   : > { %3694 = vrcp.f32 %v3138_v12 }
 0x7be   : > { %v3685_v15 = vpop.eup %3684  ;;  %3696 = vrcp.f32 %v3139_v14 }
 0x7bf   : > { %v3687_v16 = vpop.eup %3686  ;;  %v3140_v17 = vadd.f32 1.0, %v3685_v15  ;;  %3698 = vpow2.f32 %v3428_v13 }
 0x7c0   : > { %v3141_v18 = vadd.f32 1.0, %v3687_v16 }
 0x7c1   : > { %3700 = vrcp.f32 %v3140_v17 }
 0x7c2   : > { %v3689_v19 = vpop.eup %3688  ;;  %3702 = vrcp.f32 %v3141_v18 }
 0x7c3   : > { %v3691_v20 = vpop.eup %3690  ;;  %v3142_v21 = vadd.f32 1.0, %v3689_v19 }
 0x7c4   : > { %v3143_v22 = vadd.f32 1.0, %v3691_v20 }
 0x7c5   : > { %3704 = vrcp.f32 %v3142_v21 }
 0x7c6   : > { %v3693_v23 = vpop.eup %3692  ;;  %3706 = vrcp.f32 %v3143_v22 }
 0x7c7   : > { %v3695_v24 = vpop.eup %3694  ;;  %v3144_v25 = vadd.f32 1.0, %v3693_v23 }
 0x7c8   : > { %v3697_v26 = vpop.eup %3696  ;;  %v3186_v27 = vmul.f32 %v3695_v24, %v4302_v39  ;;  %v3196_v39 = vld [vmem:[%s701_s25 + $0x10] sm:$0xff] }
 0x7c9   : > { %v3699_v28 = vpop.eup %3698  ;;  %v3187_v29 = vmul.f32 %v3697_v26, %v4310_v43  ;;  %3708 = vrcp.f32 %v3144_v25 }
 0x7ca   : > { %v3145_v30 = vadd.f32 1.0, %v3699_v28 }
 0x7cb   : > { %v3701_v31 = vpop.eup %3700  ;;  %v3198_v32 = vadd.f32 %v3187_v29, %v3186_v27 }
 0x7cc   : > { %v3703_v33 = vpop.eup %3702  ;;  %v3188_v35 = vmul.f32 %v3701_v31, %v4304_v40  ;;  %3710 = vrcp.f32 %v3145_v30 }
 0x7cd   : > { %v3202_v36 = vmax.f32 %v3198_v32, 0.0  ;;  %v3189_v37 = vmul.f32 %v3703_v33, %v4312_v44 }
 0x7cf   : > { %v3705_v43 = vpop.eup %3704  ;;  %v3206_v48 = vadd.f32 %v3202_v36, %v3194_v34  ;;  %v3199_v49 = vadd.f32 %v3189_v37, %v3188_v35 }
 0x7d0   : > { %v3707_v50 = vpop.eup %3706  ;;  %v3190_v51 = vmul.f32 %v3705_v43, %v4306_v41 }
 0x7d1   : > { %3210 = vst [vmem:[%s711_s4] sm:$0xff] %v3206_v48  ;;  %v3203_v52 = vmax.f32 %v3199_v49, 0.0  ;;  %v3191_v40 = vmul.f32 %v3707_v50, %v4314_v45 }
 0x7d3   : > { %v3709_v53 = vpop.eup %3708  ;;  %v3207_v54 = vadd.f32 %v3203_v52, %v3195_v38  ;;  %v3200_v44 = vadd.f32 %v3191_v40, %v3190_v51 }
 0x7d4   : > { %v3192_v55 = vmul.f32 %v3709_v53, %v4308_v42 }
 0x7d5   : > { %3211 = vst [vmem:[%s711_s4 + $0x8] sm:$0xff] %v3207_v54  ;;  %v3204_v56 = vmax.f32 %v3200_v44, 0.0 }
 0x7d6   : > { %v3711_v57 = vpop.eup %3710 }
 0x7d7   : > { %v3208_v58 = vadd.f32 %v3204_v56, %v3196_v39  ;;  %v3193_v59 = vmul.f32 %v3711_v57, %v4316_v46 }
 0x7d9   : > { %3212 = vst [vmem:[%s711_s4 + $0x10] sm:$0xff] %v3208_v58  ;;  %v3201_v60 = vadd.f32 %v3193_v59, %v3192_v55 }
 0x7db   : > { %v3205_v61 = vmax.f32 %v3201_v60, 0.0 }
 0x7dd   : > { %v3209_v1 = vadd.f32 %v3205_v61, %v3197_v47 }
 0x7df   : > { %3213 = vst [vmem:[%s711_s4 + $0x18] sm:$0xff] %v3209_v1 }
 0x7e0 PF: > { %s32_s23 = sadd.s32 1, %s3718_s23  }
 0x7e1   : > { %p29_p4 = scmp.ge.s32.totalorder %s32_s23, 4  }
 0x7e3   :  { %31 = sbr.rel (!%p29_p4) target bundleno = 6 (0x6), region = 142 }

</bundles_post_ra>
